<compile_context>
chip_gen: v5e
topology: v5e:2x2
jax: 0.10.0
libtpu: 0.0.40
codegen_flags: <defaults>
</compile_context>

<pallas_src>
import math

import jax
import jax.numpy as jnp
from jax.experimental import pallas as pl
from jax.experimental.pallas import tpu as pltpu


def _disc_kernel(xt_ref,                      # (1, 2, TB)   feature-major x tile
                 w1_ref, b1_ref,              # (256, 2), (256, 1)
                 w2_ref, b2_ref,              # (128, 256), (128, 1)
                 w3_ref, b3_ref,              # (64, 128), (64, 1)
                 w4_ref, b4_ref,              # (64, 1),  (1, 1)
                 o_ref):                      # (1, 1, TB)
    x0 = xt_ref[0, 0:1, :]                    # (1, TB)  feature 0 across lanes
    x1 = xt_ref[0, 1:2, :]                    # (1, TB)  feature 1 across lanes

    # Layer 1 (in=2): K=2 matmul is degenerate on the MXU -> VPU outer product.
    h1 = w1_ref[:, 0:1] * x0 + w1_ref[:, 1:2] * x1 + b1_ref[...]   # (256, TB)
    h1 = jnp.maximum(h1, 0.0)                                      # ReLU (dropout = identity)

    # Layers 2/3: well-shaped MXU matmuls, batch stays on the lane axis.
    h2 = jnp.dot(w2_ref[...], h1, preferred_element_type=jnp.float32) + b2_ref[...]
    h2 = jnp.maximum(h2, 0.0)                                      # (128, TB)

    h3 = jnp.dot(w3_ref[...], h2, preferred_element_type=jnp.float32) + b3_ref[...]
    h3 = jnp.maximum(h3, 0.0)                                      # (64, TB)

    # Layer 4 (out=1): N=1 matmul is degenerate -> VPU multiply + sublane reduce.
    z = jnp.sum(h3 * w4_ref[...], axis=0, keepdims=True) + b4_ref[...]   # (1, TB)

    # Sigmoid; exp goes to the EUP, the single (1, TB) divide is negligible.
    sig = 1.0 / (1.0 + jnp.exp(-z))
    o_ref[...] = sig.reshape(o_ref.shape).astype(o_ref.dtype)      # lane-dense store


def _pick_tile_b(B):
    """Largest convenient tile that divides B, preferring >=2 grid steps (v7x megacore)."""
    for t in (512, 256, 128, 64, 32, 16, 8):
        if B % t == 0 and B // t >= 2:
            return t
    return B   # tiny / awkward batch: single grid step over the whole batch


def discriminator_forward(x, params, *, tile_b=None):
    """x: (B, 2) float32; params: w{1..4} as (out,in), b{1..4} as (out,1)."""
    B, F = x.shape
    assert F == 2
    if tile_b is None:
        tile_b = _pick_tile_b(B)
    assert B % tile_b == 0, "batch must be a multiple of the batch tile"
    n_tiles = B // tile_b

    # Feature-major batch tiles: (n_tiles, 2, tile_b).  Cheap layout plumbing in XLA.
    xt = x.reshape(n_tiles, tile_b, 2).transpose(0, 2, 1)

    w1, b1 = params["w1"], params["b1"]        # (256, 2),  (256, 1)
    w2, b2 = params["w2"], params["b2"]        # (128, 256),(128, 1)
    w3, b3 = params["w3"], params["b3"]        # (64, 128), (64, 1)
    w4, b4 = params["w4"], params["b4"]        # (1, 64),   (1, 1)
    w4t = w4.T                                  # (64, 1) for in-kernel broadcasting

    def resident(a):
        # Constant index_map -> weight/bias stays resident in VMEM across grid steps.
        return pl.BlockSpec(a.shape, lambda i: (0, 0))

    out = pl.pallas_call(
        _disc_kernel,
        out_shape=jax.ShapeDtypeStruct((n_tiles, 1, tile_b), jnp.float32),
        grid_spec=pltpu.PrefetchScalarGridSpec(
            num_scalar_prefetch=0,
            grid=(n_tiles,),
            in_specs=[
                pl.BlockSpec((1, 2, tile_b), lambda i: (i, 0, 0)),   # x tile
                resident(w1), resident(b1),
                resident(w2), resident(b2),
                resident(w3), resident(b3),
                resident(w4t), resident(b4),
            ],
            out_specs=pl.BlockSpec((1, 1, tile_b), lambda i: (i, 0, 0)),
        ),
        compiler_params=pltpu.CompilerParams(
            dimension_semantics=("parallel",),
        ),
    )(xt, w1, b1, w2, b2, w3, b3, w4t, b4)

    return out.reshape(B, 1)


def init_params(key):
    """PyTorch-style init U(-1/sqrt(fan_in), 1/sqrt(fan_in)); weights stored (out,in)."""
    dims = [(2, 256), (256, 128), (128, 64), (64, 1)]
    params = {}
    for idx, (fan_in, fan_out) in enumerate(dims, start=1):
        key, kw, kb = jax.random.split(key, 3)
        bound = 1.0 / math.sqrt(float(fan_in))
        params[f"w{idx}"] = jax.random.uniform(
            kw, (fan_out, fan_in), jnp.float32, -bound, bound)
        params[f"b{idx}"] = jax.random.uniform(
            kb, (fan_out, 1), jnp.float32, -bound, bound)
    return params


def _reference_forward(x, p):
    # Mirrors the kernel's math (layers 1 and 4 as explicit broadcast/reduce) so
    # the comparison isolates Pallas correctness rather than XLA matmul precision.
    w1, b1 = p["w1"], p["b1"]
    h1 = jnp.maximum(x[:, 0:1] * w1[:, 0][None, :]
                     + x[:, 1:2] * w1[:, 1][None, :] + b1[:, 0][None, :], 0.0)
    h2 = jnp.maximum(h1 @ p["w2"].T + p["b2"].T, 0.0)
    h3 = jnp.maximum(h2 @ p["w3"].T + p["b3"].T, 0.0)
    z = jnp.sum(h3 * p["w4"][0][None, :], axis=-1, keepdims=True) + p["b4"]
    return 1.0 / (1.0 + jnp.exp(-z))


if __name__ == "__main__":
    key = jax.random.PRNGKey(0)
    key, kx = jax.random.split(key)

    B = 64                                   # small demo batch -> tile_b=32, 2 grid steps
    x = jax.random.normal(kx, (B, 2), jnp.float32)
    params = init_params(key)

    out = discriminator_forward(x, params)
    out = jax.block_until_ready(out)

    ref = _reference_forward(x, params)
    assert out.shape == (B, 1)
    # Small slack for f32 MXU pass-decomposition / accumulation-order differences
    # between Mosaic and XLA.
    assert jnp.allclose(out, ref, atol=1e-4, rtol=1e-4), "mismatch vs reference"

    print("KERNEL_OK")
</pallas_src>

<mosaic_0001>
module attributes {stable_mosaic.version = 11 : i64} {
  func.func @_disc_kernel(%arg0: i32, %arg1: memref<1x2x32xf32, #tpu.memory_space<vmem>>, %arg2: memref<256x2xf32, #tpu.memory_space<vmem>>, %arg3: memref<256x1xf32, #tpu.memory_space<vmem>>, %arg4: memref<128x256xf32, #tpu.memory_space<vmem>>, %arg5: memref<128x1xf32, #tpu.memory_space<vmem>>, %arg6: memref<64x128xf32, #tpu.memory_space<vmem>>, %arg7: memref<64x1xf32, #tpu.memory_space<vmem>>, %arg8: memref<64x1xf32, #tpu.memory_space<vmem>>, %arg9: memref<1x1xf32, #tpu.memory_space<vmem>>, %arg10: memref<1x1x32xf32, #tpu.memory_space<vmem>>) attributes {dimension_semantics = [#tpu.dimension_semantics<parallel>], iteration_bounds = array<i64: 2>, scalar_prefetch = 0 : i64, scratch_operands = 0 : i64, tpu.core_type = #tpu.core_type<tc>, window_params = [{transform_indices = @transform_0, window_bounds = array<i64: 1, 2, 32>}, {pipeline_mode = #tpu.pipeline_mode<synchronous>, transform_indices = @transform_1, window_bounds = array<i64: 256, 2>}, {pipeline_mode = #tpu.pipeline_mode<synchronous>, transform_indices = @transform_2, window_bounds = array<i64: 256, 1>}, {pipeline_mode = #tpu.pipeline_mode<synchronous>, transform_indices = @transform_3, window_bounds = array<i64: 128, 256>}, {pipeline_mode = #tpu.pipeline_mode<synchronous>, transform_indices = @transform_4, window_bounds = array<i64: 128, 1>}, {pipeline_mode = #tpu.pipeline_mode<synchronous>, transform_indices = @transform_5, window_bounds = array<i64: 64, 128>}, {pipeline_mode = #tpu.pipeline_mode<synchronous>, transform_indices = @transform_6, window_bounds = array<i64: 64, 1>}, {pipeline_mode = #tpu.pipeline_mode<synchronous>, transform_indices = @transform_7, window_bounds = array<i64: 64, 1>}, {pipeline_mode = #tpu.pipeline_mode<synchronous>, transform_indices = @transform_8, window_bounds = array<i64: 1, 1>}, {transform_indices = @transform_9, window_bounds = array<i64: 1, 1, 32>}]} {
    %c0 = arith.constant 0 : index
    %c0_0 = arith.constant 0 : index
    %c0_1 = arith.constant 0 : index
    %0 = vector.load %arg1[%c0, %c0_0, %c0_1] : memref<1x2x32xf32, #tpu.memory_space<vmem>>, vector<1x1x32xf32>
    %1 = vector.shape_cast %0 : vector<1x1x32xf32> to vector<1x32xf32>
    %c0_2 = arith.constant 0 : index
    %c1 = arith.constant 1 : index
    %c0_3 = arith.constant 0 : index
    %2 = vector.load %arg1[%c0_2, %c1, %c0_3] : memref<1x2x32xf32, #tpu.memory_space<vmem>>, vector<1x1x32xf32>
    %3 = vector.shape_cast %2 : vector<1x1x32xf32> to vector<1x32xf32>
    %c0_4 = arith.constant 0 : index
    %c0_5 = arith.constant 0 : index
    %4 = vector.load %arg2[%c0_4, %c0_5] : memref<256x2xf32, #tpu.memory_space<vmem>>, vector<256x1xf32>
    %5 = vector.broadcast %4 : vector<256x1xf32> to vector<256x32xf32>
    %6 = vector.broadcast %1 : vector<1x32xf32> to vector<256x32xf32>
    %7 = arith.mulf %5, %6 : vector<256x32xf32>
    %c0_6 = arith.constant 0 : index
    %c1_7 = arith.constant 1 : index
    %8 = vector.load %arg2[%c0_6, %c1_7] : memref<256x2xf32, #tpu.memory_space<vmem>>, vector<256x1xf32>
    %9 = vector.broadcast %8 : vector<256x1xf32> to vector<256x32xf32>
    %10 = vector.broadcast %3 : vector<1x32xf32> to vector<256x32xf32>
    %11 = arith.mulf %9, %10 : vector<256x32xf32>
    %12 = arith.addf %7, %11 : vector<256x32xf32>
    %c0_8 = arith.constant 0 : index
    %c0_9 = arith.constant 0 : index
    %13 = vector.load %arg3[%c0_8, %c0_9] : memref<256x1xf32, #tpu.memory_space<vmem>>, vector<256x1xf32>
    %14 = vector.broadcast %13 : vector<256x1xf32> to vector<256x32xf32>
    %15 = arith.addf %12, %14 : vector<256x32xf32>
    %cst = arith.constant 0.000000e+00 : f32
    %16 = vector.broadcast %cst : f32 to vector<256x32xf32>
    %17 = arith.maximumf %15, %16 : vector<256x32xf32>
    %c0_10 = arith.constant 0 : index
    %c0_11 = arith.constant 0 : index
    %18 = vector.load %arg4[%c0_10, %c0_11] : memref<128x256xf32, #tpu.memory_space<vmem>>, vector<128x256xf32>
    %cst_12 = arith.constant dense<0.000000e+00> : vector<128x32xf32>
    %19 = tpu.matmul %18, %17, %cst_12 {dimension_numbers = #tpu.dot_dimension_numbers<[1], [0], [0], [1], [0, 0, 1, 1], [], []>} : vector<128x256xf32>, vector<256x32xf32>, vector<128x32xf32> -> vector<128x32xf32>
    %c0_13 = arith.constant 0 : index
    %c0_14 = arith.constant 0 : index
    %20 = vector.load %arg5[%c0_13, %c0_14] : memref<128x1xf32, #tpu.memory_space<vmem>>, vector<128x1xf32>
    %21 = vector.broadcast %20 : vector<128x1xf32> to vector<128x32xf32>
    %22 = arith.addf %19, %21 : vector<128x32xf32>
    %cst_15 = arith.constant 0.000000e+00 : f32
    %23 = vector.broadcast %cst_15 : f32 to vector<128x32xf32>
    %24 = arith.maximumf %22, %23 : vector<128x32xf32>
    %c0_16 = arith.constant 0 : index
    %c0_17 = arith.constant 0 : index
    %25 = vector.load %arg6[%c0_16, %c0_17] : memref<64x128xf32, #tpu.memory_space<vmem>>, vector<64x128xf32>
    %cst_18 = arith.constant dense<0.000000e+00> : vector<64x32xf32>
    %26 = tpu.matmul %25, %24, %cst_18 {dimension_numbers = #tpu.dot_dimension_numbers<[1], [0], [0], [1], [0, 0, 1, 1], [], []>} : vector<64x128xf32>, vector<128x32xf32>, vector<64x32xf32> -> vector<64x32xf32>
    %c0_19 = arith.constant 0 : index
    %c0_20 = arith.constant 0 : index
    %27 = vector.load %arg7[%c0_19, %c0_20] : memref<64x1xf32, #tpu.memory_space<vmem>>, vector<64x1xf32>
    %28 = vector.broadcast %27 : vector<64x1xf32> to vector<64x32xf32>
    %29 = arith.addf %26, %28 : vector<64x32xf32>
    %cst_21 = arith.constant 0.000000e+00 : f32
    %30 = vector.broadcast %cst_21 : f32 to vector<64x32xf32>
    %31 = arith.maximumf %29, %30 : vector<64x32xf32>
    %c0_22 = arith.constant 0 : index
    %c0_23 = arith.constant 0 : index
    %32 = vector.load %arg8[%c0_22, %c0_23] : memref<64x1xf32, #tpu.memory_space<vmem>>, vector<64x1xf32>
    %33 = vector.broadcast %32 : vector<64x1xf32> to vector<64x32xf32>
    %34 = arith.mulf %31, %33 : vector<64x32xf32>
    %cst_24 = arith.constant dense<0.000000e+00> : vector<32xf32>
    %35 = vector.multi_reduction <add>, %34, %cst_24 [0] : vector<64x32xf32> to vector<32xf32>
    %36 = vector.shape_cast %35 : vector<32xf32> to vector<1x32xf32>
    %c0_25 = arith.constant 0 : index
    %c0_26 = arith.constant 0 : index
    %37 = vector.load %arg9[%c0_25, %c0_26] : memref<1x1xf32, #tpu.memory_space<vmem>>, vector<1x1xf32>
    %38 = vector.broadcast %37 : vector<1x1xf32> to vector<1x32xf32>
    %39 = arith.addf %36, %38 : vector<1x32xf32>
    %cst_27 = arith.constant 0.000000e+00 : f32
    %40 = vector.broadcast %cst_27 : f32 to vector<1x32xf32>
    %41 = arith.subf %40, %39 : vector<1x32xf32>
    %42 = math.exp %41 : vector<1x32xf32>
    %cst_28 = arith.constant 1.000000e+00 : f32
    %43 = vector.broadcast %cst_28 : f32 to vector<1x32xf32>
    %44 = arith.addf %43, %42 : vector<1x32xf32>
    %cst_29 = arith.constant 1.000000e+00 : f32
    %45 = vector.broadcast %cst_29 : f32 to vector<1x32xf32>
    %46 = arith.divf %45, %44 : vector<1x32xf32>
    %47 = vector.shape_cast %46 : vector<1x32xf32> to vector<1x1x32xf32>
    %c0_30 = arith.constant 0 : index
    %c0_31 = arith.constant 0 : index
    %c0_32 = arith.constant 0 : index
    %48 = vector.load %arg10[%c0_30, %c0_31, %c0_32] : memref<1x1x32xf32, #tpu.memory_space<vmem>>, vector<1x1x32xf32>
    tpu.vector_store %arg10[%c0_30, %c0_31, %c0_32], %47 {strides = array<i32>} : memref<1x1x32xf32, #tpu.memory_space<vmem>>, vector<1x1x32xf32>,
    return
  }
  func.func @transform_0(%arg0: i32) -> (i32, i32, i32) {
    %c0_i32 = arith.constant 0 : i32
    %c0_i32_0 = arith.constant 0 : i32
    %c0_i32_1 = arith.constant 0 : i32
    return %arg0, %c0_i32, %c0_i32_0 : i32, i32, i32
  }
  func.func @transform_1(%arg0: i32) -> (i32, i32) {
    %c0_i32 = arith.constant 0 : i32
    %c0_i32_0 = arith.constant 0 : i32
    %c0_i32_1 = arith.constant 0 : i32
    return %c0_i32, %c0_i32_0 : i32, i32
  }
  func.func @transform_2(%arg0: i32) -> (i32, i32) {
    %c0_i32 = arith.constant 0 : i32
    %c0_i32_0 = arith.constant 0 : i32
    %c0_i32_1 = arith.constant 0 : i32
    return %c0_i32, %c0_i32_0 : i32, i32
  }
  func.func @transform_3(%arg0: i32) -> (i32, i32) {
    %c0_i32 = arith.constant 0 : i32
    %c0_i32_0 = arith.constant 0 : i32
    %c0_i32_1 = arith.constant 0 : i32
    return %c0_i32, %c0_i32_0 : i32, i32
  }
  func.func @transform_4(%arg0: i32) -> (i32, i32) {
    %c0_i32 = arith.constant 0 : i32
    %c0_i32_0 = arith.constant 0 : i32
    %c0_i32_1 = arith.constant 0 : i32
    return %c0_i32, %c0_i32_0 : i32, i32
  }
  func.func @transform_5(%arg0: i32) -> (i32, i32) {
    %c0_i32 = arith.constant 0 : i32
    %c0_i32_0 = arith.constant 0 : i32
    %c0_i32_1 = arith.constant 0 : i32
    return %c0_i32, %c0_i32_0 : i32, i32
  }
  func.func @transform_6(%arg0: i32) -> (i32, i32) {
    %c0_i32 = arith.constant 0 : i32
    %c0_i32_0 = arith.constant 0 : i32
    %c0_i32_1 = arith.constant 0 : i32
    return %c0_i32, %c0_i32_0 : i32, i32
  }
  func.func @transform_7(%arg0: i32) -> (i32, i32) {
    %c0_i32 = arith.constant 0 : i32
    %c0_i32_0 = arith.constant 0 : i32
    %c0_i32_1 = arith.constant 0 : i32
    return %c0_i32, %c0_i32_0 : i32, i32
  }
  func.func @transform_8(%arg0: i32) -> (i32, i32) {
    %c0_i32 = arith.constant 0 : i32
    %c0_i32_0 = arith.constant 0 : i32
    %c0_i32_1 = arith.constant 0 : i32
    return %c0_i32, %c0_i32_0 : i32, i32
  }
  func.func @transform_9(%arg0: i32) -> (i32, i32, i32) {
    %c0_i32 = arith.constant 0 : i32
    %c0_i32_0 = arith.constant 0 : i32
    %c0_i32_1 = arith.constant 0 : i32
    return %arg0, %c0_i32, %c0_i32_0 : i32, i32, i32
  }
}

</mosaic_0001>

<bundles_post_ra>
// kernel: tpu_custom_call.1
= control target key start
LH: loop header
LB: loop body
LE: loop exit
PB: predicated region body
PF: predicated region fallthrough
CT: control target
= control target key end

     0   :  { %s2674_s0 = inlined_call_operand.vmem [shape: f32[2,2,32], index: 0, kind: input, shape index: {}]   ;;  %s2675_s1 = inlined_call_operand.vmem [shape: f32[256,2], index: 1, kind: input, shape index: {}]   ;;  %s2676_s2 = inlined_call_operand.vmem [shape: f32[256,1], index: 2, kind: input, shape index: {}]   ;;  %s2677_s3 = inlined_call_operand.vmem [shape: f32[128,256], index: 3, kind: input, shape index: {}]   ;;  %s2678_s4 = inlined_call_operand.vmem [shape: f32[128,1], index: 4, kind: input, shape index: {}]   ;;  %s2679_s5 = inlined_call_operand.vmem [shape: f32[64,128], index: 5, kind: input, shape index: {}]   ;;  %s2680_s6 = inlined_call_operand.vmem [shape: f32[64,1], index: 6, kind: input, shape index: {}]   ;;  %s2681_s7 = inlined_call_operand.vmem [shape: f32[64,1], index: 7, kind: input, shape index: {}]   ;;  %s2682_s8 = inlined_call_operand.<no memory space> [shape: f32[1,1], index: 8, kind: input, shape index: {}]   ;;  %s2683_s9 = inlined_call_operand.hbm [shape: f32[2,1,32], index: 9, kind: output, shape index: {}]  }
   0x1   :  { %v14_v0 = vstv %s2682_s8 }
   0x2   :  { %15 = vst [vmem:[#allocation2] sm:$0x1] %v14_v0 }
   0x3   :  { %16 = vsyncpa [#allocation4], 0 }
   0x4   :  { %18 = vsyncpa [#allocation4 + $0x1], 0  ;;  %s1795_s11 = smov 0   ;;  %s1797_s12 = smov 0  }
   0x5   :  { %s1799_s13 = smov 0   ;;  %s1801_s14 = smov 0  }
   0x6 LB: > { %s1816_s8 = sadd.s32 4294967295, %s1738_s14   ;;  %s1559_s15 = sadd.s32 4294967294, %s1738_s14   ;;  %s1738_s14 = sphi %s1801_s14, %s2689_s14   ;;  %s1734_s13 = sphi %s1799_s13, %s2688_s13   ;;  %s1730_s12 = sphi %s1797_s12, %s2687_s12   ;;  %s1726_s11 = sphi %s1795_s11, %s2686_s11  }
   0x7   : > { %s1820_s16 = sadd.s32 1, %s1738_s14   ;;  %s225_s17 = sadd.s32 1, %s1734_s13 }
   0x8   : > { %s222_s18 = ssub.s32 %s1738_s14, %s1820_s16  ;;  %p235_p0 = scmp.ne.s32.totalorder %s1734_s13, %s1730_s12 }
   0x9   : > { %p223_p1 = scmp.eq.s32.totalorder %s222_s18, 0  ;;  %p236_p2 = scmp.eq.s32.totalorder %s1816_s8, 1 }
   0xa   : > { %p241_p3 = scmp.ne.s32.totalorder %s1730_s12, %s1726_s11  ;;  %p242_p4 = scmp.eq.s32.totalorder %s1559_s15, 1 }
   0xb   : > { %s1831_s19 = scalar_select %p223_p1, %s1734_s13, %s225_s17  }
   0xc   : > { %p1833_p5 = por %p236_p2, %p235_p0  ;;  %p1837_p6 = por %p242_p4, %p241_p3 }
   0xd   : > { %p1562_p7 = scmp.ge.s32.totalorder %s1738_s14, 1  ;;  %p291_p8 = scmp.lt.s32.totalorder %s1738_s14, 3 }
   0xf   : > { %p292_p9 = pnand %p1562_p7, %p291_p8 }
  0x10   : > { %p325_p10 = scmp.lt.s32.totalorder (!%p292_p9), %s1816_s8, 1  ;;  %s323_s17 = sand.u32 (!%p292_p9), 1, %s1730_s12  }
  0x11   : > { %295 = sbr.rel (%p292_p9) target bundleno = 904 (0x388), region = 56  ;;  %s1500_s23 = scalar_lea.hbm (!%p292_p9), %s2683_s9, %s1816_s8 }
  0x12   : > { %s324_s24 = scalar_lea.vmem (!%p292_p9), [#allocation3], %s323_s17  ;;  %s1696_s30 = scalar_lea.hbm (!%p292_p9), %s2683_s9, 2 }
  0x13   : > { %s1502_s25 = sshll.u32 (!%p292_p9), %s324_s24, 4  ;;  %s1503_s25 = int_to_ptr.vmem [resolvable:$true] %s1502_s25 }
  0x16   : > { %v1846_v1 = vld [vmem:[%s2675_s1 + $0x20] sm:$0xff]  ;;  %v1851_v2 = vld [vmem:[%s2675_s1 + $0x10] sm:$0xff]  ;;  %v1740_v4 = vmov 0   ;;  %s326_s28 = scalar_select %p325_p10, %s1816_s8, 1  ;;  %v1874_v5 = vld [vmem:[%s2675_s1 + $0x28] sm:$0xff]  ;;  %v1741_v34 = vmov 1  }
  0x17   : > { %v1856_v3 = vld [vmem:[%s2675_s1] sm:$0xff]  ;;  %1641 = vset.pattern.permute.xlu2 %v1740_v4  ;;  %1640 = vset.pattern.permute.xlu1 %v1740_v4  ;;  %v1879_v6 = vld [vmem:[%s2675_s1 + $0x18] sm:$0xff]  ;;  %v1884_v7 = vld [vmem:[%s2675_s1 + $0x8] sm:$0xff]  ;;  %vm1440_vm0 = vcmask 261120   ;;  %vm1489_vm4 = vcmask 253952   ;;  %s1492_s8 = scalar_lea.sflag [#allocation4], %s323_s17 }
  0x18   : > { %1639 = vset.pattern.permute.xlu0 %v1740_v4  ;;  %385 = vperm.xlu2 %1641, %v1846_v1   ;;  %s1563_s29 = sshll.u32 %s326_s28, 1  ;;  %v1892_v8 = vld [vmem:[%s2675_s1 + $0x40] sm:$0xff]  ;;  %v1897_v9 = vld [vmem:[%s2675_s1 + $0x38] sm:$0xff]  ;;  %v1902_v10 = vld [vmem:[%s2675_s1 + $0x30] sm:$0xff] }
  0x19   : > { %375 = vperm.xlu1 %1640, %v1851_v2   ;;  %365 = vperm.xlu0 %1639, %v1856_v3   ;;  %s1869_s15 = scalar_lea.vmem %s2674_s0, %s1563_s29  ;;  %v1910_v11 = vld [vmem:[%s2675_s1 + $0x58] sm:$0xff]  ;;  %v1915_v12 = vld [vmem:[%s2675_s1 + $0x50] sm:$0xff]  ;;  %v1920_v13 = vld [vmem:[%s2675_s1 + $0x48] sm:$0xff] }
  0x1a   : > { %v345_v14 = vld [vmem:[%s2675_s1 + $0x70] sm:$0xff]  ;;  %v344_v15 = vld [vmem:[%s2675_s1 + $0x68] sm:$0xff]  ;;  %v1934_v16 = vld [vmem:[%s2675_s1 + $0x60] sm:$0xff] }
  0x1b   : > { %v1940_v17 = vld [vmem:[%s2675_s1 + $0x88] sm:$0xff]  ;;  %v1945_v18 = vld [vmem:[%s2675_s1 + $0x80] sm:$0xff]  ;;  %v346_v19 = vld [vmem:[%s2675_s1 + $0x78] sm:$0xff] }
  0x1c   : > { %v1955_v20 = vld [vmem:[%s2675_s1 + $0xa0] sm:$0xff]  ;;  %v1960_v21 = vld [vmem:[%s2675_s1 + $0x98] sm:$0xff]  ;;  %v1965_v22 = vld [vmem:[%s2675_s1 + $0x90] sm:$0xff] }
  0x1d   : > { %v1973_v23 = vld [vmem:[%s2675_s1 + $0xb8] sm:$0xff]  ;;  %v1978_v24 = vld [vmem:[%s2675_s1 + $0xb0] sm:$0xff]  ;;  %v1983_v25 = vld [vmem:[%s2675_s1 + $0xa8] sm:$0xff] }
  0x1e   : > { %v1991_v26 = vld [vmem:[%s2675_s1 + $0xd0] sm:$0xff]  ;;  %v1996_v27 = vld [vmem:[%s2675_s1 + $0xc8] sm:$0xff]  ;;  %v2001_v28 = vld [vmem:[%s2675_s1 + $0xc0] sm:$0xff] }
  0x1f   : > { %v2009_v29 = vld [vmem:[%s2675_s1 + $0xe8] sm:$0xff]  ;;  %v2014_v30 = vld [vmem:[%s2675_s1 + $0xe0] sm:$0xff]  ;;  %v2019_v31 = vld [vmem:[%s2675_s1 + $0xd8] sm:$0xff] }
  0x20   : > { %390 = vperm.xlu2 %1641, %v1874_v5   ;;  %v2027_v32 = vld [vmem:[%s2675_s1 + $0xf8] sm:$0xff]  ;;  %v2032_v33 = vld [vmem:[%s2675_s1 + $0xf0] sm:$0xff]  ;;  %v762_v35 = vld [vmem:[%s2676_s2 + $0x68] sm:$0xff] }
  0x21   : > { %380 = vperm.xlu1 %1640, %v1879_v6   ;;  %370 = vperm.xlu0 %1639, %v1884_v7   ;;  %v757_v37 = vld [vmem:[%s2676_s2 + $0x40] sm:$0xff]  ;;  %v764_v38 = vld [vmem:[%s2676_s2 + $0x78] sm:$0xff]  ;;  %v751_v40 = vld [vmem:[%s2676_s2 + $0x10] sm:$0xff] }
  0x22   : > { %v763_v41 = vld [vmem:[%s2676_s2 + $0x70] sm:$0xff]  ;;  %v778_v43 = vld [vmem:[%s2676_s2 + $0xe8] sm:$0xff]  ;;  %v761_v45 = vld [vmem:[%s2676_s2 + $0x60] sm:$0xff] }
  0x23   : > { %v773_v48 = vld [vmem:[%s2676_s2 + $0xc0] sm:$0xff]  ;;  %v760_v50 = vld [vmem:[%s2676_s2 + $0x58] sm:$0xff]  ;;  %v759_v54 = vld [vmem:[%s2676_s2 + $0x50] sm:$0xff] }
  0x24   : > { %v758_v58 = vld [vmem:[%s2676_s2 + $0x48] sm:$0xff]  ;;  %v756_v0 = vld [vmem:[%s2676_s2 + $0x38] sm:$0xff] }
  0x28   : > { %405 = vperm.xlu2 %1641, %v1892_v8  }
  0x29   : > { %400 = vperm.xlu1 %1640, %v1897_v9   ;;  %395 = vperm.xlu0 %1639, %v1902_v10  }
  0x30   : > { %420 = vperm.xlu2 %1641, %v1910_v11  }
  0x31   : > { %415 = vperm.xlu1 %1640, %v1915_v12   ;;  %410 = vperm.xlu0 %1639, %v1920_v13  }
  0x38   : > { %435 = vperm.xlu2 %1641, %v345_v14  }
  0x39   : > { %430 = vperm.xlu1 %1640, %v344_v15   ;;  %425 = vperm.xlu0 %1639, %v1934_v16  }
  0x40   : > { %450 = vperm.xlu2 %1641, %v1940_v17  }
  0x41   : > { %445 = vperm.xlu1 %1640, %v1945_v18   ;;  %440 = vperm.xlu0 %1639, %v346_v19  }
  0x48   : > { %465 = vperm.xlu2 %1641, %v1955_v20  }
  0x49   : > { %460 = vperm.xlu1 %1640, %v1960_v21   ;;  %455 = vperm.xlu0 %1639, %v1965_v22  }
  0x50   : > { %480 = vperm.xlu2 %1641, %v1973_v23  }
  0x51   : > { %475 = vperm.xlu1 %1640, %v1978_v24   ;;  %470 = vperm.xlu0 %1639, %v1983_v25  }
  0x58   : > { %495 = vperm.xlu2 %1641, %v1991_v26  }
  0x59   : > { %490 = vperm.xlu1 %1640, %v1996_v27   ;;  %485 = vperm.xlu0 %1639, %v2001_v28  }
  0x60   : > { %510 = vperm.xlu2 %1641, %v2009_v29  }
  0x61   : > { %505 = vperm.xlu1 %1640, %v2014_v30   ;;  %500 = vperm.xlu0 %1639, %v2019_v31  }
  0x68   : > { %1642 = vset.pattern.permute.xlu2 %v1741_v34 }
  0x69   : > { %520 = vperm.xlu1 %1640, %v2027_v32   ;;  %515 = vperm.xlu0 %1639, %v2032_v33  }
  0x6a   : > { %557 = vperm.xlu2 %1642, %v1856_v3  }
  0x71   : > { %1643 = vset.pattern.permute.xlu1 %v1741_v34  ;;  %848 = vperm.xlu0 %1639, %v762_v35  }
  0x72   : > { %617 = vperm.xlu1 %1643, %v346_v19   ;;  %613 = vperm.xlu2 %1642, %v345_v14   ;;  %v2042_v36 = vpop.permute.xlu2 %385  ;;  %v753_v19 = vld [vmem:[%s2676_s2 + $0x20] sm:$0xff] }
  0x79   : > { %823 = vperm.xlu0 %1639, %v757_v37  }
  0x7a   : > { %609 = vperm.xlu1 %1643, %v344_v15   ;;  %1644 = vset.pattern.permute.xlu2 %v1740_v4  ;;  %v2051_v39 = vpop.permute.xlu2 %390  ;;  %v2160_v15 = vld [vmem:[%s1869_s15 + $0x1] ss:$0 sm:$0xff] }
  0x7b   : > { %858 = vperm.xlu2 %1644, %v764_v38   ;;  %v750_v38 = vld [vmem:[%s2676_s2 + $0x8] sm:$0xff] }
  0x81   : > { %793 = vperm.xlu0 %1639, %v751_v40  }
  0x82   : > { %1645 = vset.pattern.permute.xlu1 %v1740_v4  ;;  %v2060_v42 = vpop.permute.xlu2 %405 }
  0x83   : > { %853 = vperm.xlu1 %1645, %v763_v41   ;;  %1646 = vset.pattern.permute.xlu2 %v1741_v34  ;;  %v768_v41 = vld [vmem:[%s2676_s2 + $0x98] sm:$0xff] }
  0x84   : > { %601 = vperm.xlu2 %1646, %v1910_v11   ;;  %v754_v11 = vld [vmem:[%s2676_s2 + $0x28] sm:$0xff] }
  0x89   : > { %928 = vperm.xlu0 %1639, %v778_v43  }
  0x8a   : > { %v2067_v44 = vpop.permute.xlu2 %420 }
  0x8b   : > { %1647 = vset.pattern.permute.xlu1 %v1741_v34  ;;  %v2073_v46 = vpop.permute.xlu1 %375  ;;  %v366_v47 = vpop.permute.xlu0 %365 }
  0x8c   : > { %597 = vperm.xlu1 %1647, %v1915_v12   ;;  %1648 = vset.pattern.permute.xlu2 %v1740_v4 }
  0x8d   : > { %843 = vperm.xlu2 %1648, %v761_v45   ;;  %v749_v45 = vld [vmem:[%s2676_s2] sm:$0xff] }
  0x91   : > { %903 = vperm.xlu0 %1639, %v773_v48   ;;  %v1052_v48 = vld [vmem:[%s2678_s4 + $0x78] sm:$0xff] }
  0x92   : > { %v2080_v49 = vpop.permute.xlu2 %435 }
  0x93   : > { %v2085_v51 = vpop.permute.xlu1 %380  ;;  %v2087_v52 = vpop.permute.xlu0 %370 }
  0x94   : > { %593 = vperm.xlu1 %1647, %v1920_v13  }
  0x95   : > { %838 = vperm.xlu2 %1648, %v760_v50  }
  0x99   : > { %1661 = vset.pattern.permute.xlu0 %v1741_v34 }
  0x9a   : > { %561 = vperm.xlu0 %1661, %v1884_v7   ;;  %v2092_v53 = vpop.permute.xlu2 %450 }
  0x9b   : > { %v2097_v55 = vpop.permute.xlu1 %400  ;;  %v2099_v56 = vpop.permute.xlu0 %395 }
  0x9c   : > { %1649 = vset.pattern.permute.xlu1 %v1740_v4 }
  0x9d   : > { %833 = vperm.xlu1 %1649, %v759_v54   ;;  %1650 = vset.pattern.permute.xlu2 %v1741_v34  ;;  %v780_v54 = vld [vmem:[%s2676_s2 + $0xf8] sm:$0xff] }
  0x9e   : > { %585 = vperm.xlu2 %1650, %v1897_v9   ;;  %v755_v9 = vld [vmem:[%s2676_s2 + $0x30] sm:$0xff] }
  0xa2   : > { %605 = vperm.xlu0 %1661, %v1934_v16   ;;  %v2105_v57 = vpop.permute.xlu2 %465 }
  0xa3   : > { %v2110_v59 = vpop.permute.xlu1 %415  ;;  %v2112_v60 = vpop.permute.xlu0 %410 }
  0xa5   : > { %828 = vperm.xlu1 %1649, %v758_v58  }
  0xa6   : > { %581 = vperm.xlu2 %1650, %v1902_v10  }
  0xaa   : > { %589 = vperm.xlu0 %1661, %v1892_v8   ;;  %v2116_v61 = vpop.permute.xlu2 %480 }
  0xab   : > { %v2118_v62 = vpop.permute.xlu1 %430  ;;  %v2120_v63 = vpop.permute.xlu0 %425 }
  0xad   : > { %1651 = vset.pattern.permute.xlu1 %v1741_v34 }
  0xae   : > { %577 = vperm.xlu1 %1651, %v1874_v5   ;;  %1652 = vset.pattern.permute.xlu2 %v1740_v4 }
  0xaf   : > { %818 = vperm.xlu2 %1652, %v756_v0   ;;  %v1049_v0 = vld [vmem:[%s2678_s4 + $0x60] sm:$0xff] }
  0xb2   : > { %569 = vperm.xlu0 %1661, %v1879_v6   ;;  %v2129_v3 = vpop.permute.xlu2 %495 }
  0xb3   : > { %v2131_v7 = vpop.permute.xlu1 %445  ;;  %v441_v8 = vpop.permute.xlu0 %440 }
  0xb6   : > { %573 = vperm.xlu1 %1651, %v1846_v1   ;;  %v2151_v1 = vld [vmem:[%s1869_s15] ss:$0 sm:$0xff]  ;;  %s1504_s15 = sshll.u32 %s1500_s23, 4  ;;  %s1505_s15 = int_to_ptr.hbm [resolvable:$true] %s1504_s15 }
  0xb7   : > { %813 = vperm.xlu2 %1652, %v755_v9   ;;  %v524_v12 = vmul.f32 %v2151_v1, %v366_v47  ;;  %s1690_s26 = sshra.s32 %s1505_s15, 4  ;;  %s1691_s26 = int_to_ptr.hbm [resolvable:$true] %s1690_s26 }
  0xb8   : > { %s1692_s27 = scalar_lea.hbm %s1691_s26, 1  ;;  %p1697_p0 = scmp.lt.s32.totalorder %s1691_s26, %s2683_s9 }
  0xb9   : > { %p1693_p11 = scmp.ne.s32.totalorder %s1691_s26, %s1692_s27  ;;  %p1698_p1 = scmp.lt.s32.totalorder %s1696_s30, %s1692_s27 }
  0xba   : > { %673 = vperm.xlu0 %1661, %v2009_v29   ;;  %v2138_v5 = vpop.permute.xlu2 %510 }
  0xbb   : > { %v2140_v10 = vpop.permute.xlu1 %460  ;;  %v2142_v6 = vpop.permute.xlu0 %455  ;;  %p1694_p12 = pnand %p1693_p11, %p1833_p5  ;;  %p1699_p2 = por %p1698_p1, %p1697_p0 }
  0xbd   : > { %p1695_p13 = pneg %p1694_p12 }
  0xbe   : > { %1653 = vset.pattern.permute.xlu1 %v1740_v4 }
  0xbf   : > { %808 = vperm.xlu1 %1653, %v754_v11   ;;  %1654 = vset.pattern.permute.xlu2 %v1741_v34  ;;  %p1700_p3 = pnand %p1699_p2, %p1695_p13 }
  0xc0   : > { %565 = vperm.xlu2 %1654, %v1851_v2   ;;  %v752_v2 = vld [vmem:[%s2676_s2 + $0x18] sm:$0xff] }
  0xc2   : > { %653 = vperm.xlu0 %1661, %v2001_v28  }
  0xc3   : > { %v2155_v13 = vpop.permute.xlu1 %475  ;;  %v2157_v14 = vpop.permute.xlu0 %470 }
  0xc4   : > { %v558_v16 = vpop.permute.xlu2 %557 }
  0xc5   : > { %v685_v29 = vmul.f32 %v2160_v15, %v558_v16 }
  0xc7   : > { %803 = vperm.xlu1 %1653, %v753_v19   ;;  %v2169_v28 = vadd.f32 %v685_v29, %v524_v12  ;;  %v779_v12 = vld [vmem:[%s2676_s2 + $0xf0] sm:$0xff] }
  0xc8   : > { %1655 = vset.pattern.permute.xlu2 %v1740_v4 }
  0xc9   : > { %798 = vperm.xlu2 %1655, %v752_v2   ;;  %v1046_v2 = vld [vmem:[%s2678_s4 + $0x48] sm:$0xff] }
  0xca   : > { %633 = vperm.xlu0 %1661, %v1960_v21  }
  0xcb   : > { %v2173_v35 = vpop.permute.xlu1 %490  ;;  %v2175_v37 = vpop.permute.xlu0 %485 }
  0xcc   : > { %v614_v40 = vpop.permute.xlu2 %613 }
  0xcf   : > { %788 = vperm.xlu1 %1653, %v750_v38  }
  0xd1   : > { %1656 = vset.pattern.permute.xlu2 %v1741_v34 }
  0xd2   : > { %681 = vperm.xlu2 %1656, %v2027_v32   ;;  %1666 = vset.pattern.permute.xlu0 %v1740_v4 }
  0xd3   : > { %v2186_v21 = vpop.permute.xlu1 %505  ;;  %878 = vperm.xlu0 %1666, %v768_v41   ;;  %v2188_v43 = vpop.permute.xlu0 %500 }
  0xd5   : > { %v859_v47 = vpop.permute.xlu2 %858 }
  0xd7   : > { %783 = vperm.xlu1 %1653, %v749_v45  }
  0xda   : > { %677 = vperm.xlu2 %1656, %v2032_v33   ;;  %v539_v33 = vmul.f32 %v2151_v1, %v441_v8 }
  0xdb   : > { %v2197_v32 = vpop.permute.xlu1 %520  ;;  %v2199_v50 = vpop.permute.xlu0 %515  ;;  %1130 = vperm.xlu0 %1666, %v1052_v48  }
  0xde   : > { %v2204_v58 = vpop.permute.xlu2 %601 }
  0xdf   : > { %938 = vperm.xlu1 %1653, %v780_v54   ;;  %v537_v54 = vmul.f32 %v2151_v1, %v2118_v62 }
  0xe2   : > { %669 = vperm.xlu2 %1656, %v2014_v30  }
  0xe3   : > { %v849_v9 = vpop.permute.xlu0 %848  ;;  %1115 = vperm.xlu0 %1666, %v1049_v0   ;;  %v1043_v0 = vld [vmem:[%s2678_s4 + $0x30] sm:$0xff] }
  0xe4   : > { %v618_v11 = vpop.permute.xlu1 %617 }
  0xe5   : > { %v700_v16 = vmul.f32 %v2160_v15, %v618_v11 }
  0xe7   : > { %v732_v19 = vadd.f32 %v700_v16, %v539_v33  ;;  %933 = vperm.xlu1 %1653, %v779_v12   ;;  %v2215_v29 = vpop.permute.xlu2 %843  ;;  %v538_v33 = vmul.f32 %v2151_v1, %v2080_v49  ;;  %v1040_v49 = vld [vmem:[%s2678_s4 + $0x18] sm:$0xff] }
  0xe9   : > { %v956_v30 = vadd.f32 %v859_v47, %v732_v19  ;;  %v699_v47 = vmul.f32 %v2160_v15, %v614_v40 }
  0xea   : > { %665 = vperm.xlu2 %1656, %v2019_v31   ;;  %v777_v31 = vld [vmem:[%s2676_s2 + $0xe0] sm:$0xff] }
  0xeb   : > { %v2221_v8 = vpop.permute.xlu0 %823  ;;  %v988_v38 = vmax.f32 %v956_v30, 0.0  ;;  %1100 = vperm.xlu0 %1666, %v1046_v2   ;;  %v731_v40 = vadd.f32 %v699_v47, %v538_v33  ;;  %v776_v30 = vld [vmem:[%s2676_s2 + $0xd8] sm:$0xff]  ;;  %v1289_v33 = vld [vmem:[%s2680_s6 + $0x10] sm:$0xff] }
  0xec   : > { %v610_v41 = vpop.permute.xlu1 %609 }
  0xed   : > { %1133 = vmatpush.msra.mxu0 %v988_v38  ;;  %1566 = vmatpush.msra.mxu3 %v988_v38  ;;  %v698_v45 = vmul.f32 %v2160_v15, %v610_v41 }
  0xef   : > { %1657 = vset.pattern.permute.xlu1 %v1741_v34  ;;  %v2225_v48 = vpop.permute.xlu2 %838  ;;  %v730_v11 = vadd.f32 %v698_v45, %v537_v54  ;;  %v1037_v54 = vld [vmem:[%s2678_s4] sm:$0xff] }
  0xf0   : > { %661 = vperm.xlu1 %1657, %v1991_v26  }
  0xf1   : > { %v954_v16 = vadd.f32 %v849_v9, %v730_v11 }
  0xf2   : > { %1658 = vset.pattern.permute.xlu2 %v1740_v4 }
  0xf3   : > { %923 = vperm.xlu2 %1658, %v777_v31   ;;  %v2240_v62 = vpop.permute.xlu0 %793  ;;  %1085 = vperm.xlu0 %1666, %v1043_v0   ;;  %v986_v38 = vmax.f32 %v954_v16, 0.0  ;;  %v774_v0 = vld [vmem:[%s2676_s2 + $0xc8] sm:$0xff]  ;;  %v772_v16 = vld [vmem:[%s2676_s2 + $0xb8] sm:$0xff] }
  0xf5   : > { %v854_v26 = vpop.permute.xlu1 %853 }
  0xf6   : > { %v955_v12 = vadd.f32 %v854_v26, %v731_v40 }
  0xf8   : > { %v987_v19 = vmax.f32 %v955_v12, 0.0  ;;  %657 = vperm.xlu1 %1657, %v1996_v27   ;;  %v586_v2 = vpop.permute.xlu2 %585  ;;  %v775_v27 = vld [vmem:[%s2676_s2 + $0xd0] sm:$0xff] }
  0xfa   : > { %1134 = vmatpush.msra.mxu0 %v987_v19  ;;  %1567 = vmatpush.msra.mxu3 %v987_v19  ;;  %v696_v19 = vmul.f32 %v2160_v15, %v2204_v58 }
  0xfb   : > { %918 = vperm.xlu2 %1658, %v776_v30   ;;  %v2249_v41 = vpop.permute.xlu0 %928  ;;  %1070 = vperm.xlu0 %1666, %v1040_v49   ;;  %v535_v30 = vmul.f32 %v2151_v1, %v2067_v44  ;;  %v536_v49 = vmul.f32 %v2151_v1, %v2120_v63  ;;  %v1292_v44 = vld [vmem:[%s2680_s6 + $0x28] sm:$0xff]  ;;  %v533_v63 = vmul.f32 %v2151_v1, %v2112_v60 }
  0xfc   : > { %1135 = vmatpush.msra.mxu0 %v986_v38  ;;  %1568 = vmatpush.msra.mxu3 %v986_v38 }
  0xfe   : > { %v598_v9 = vpop.permute.xlu1 %597 }
  0xff   : > { %v695_v38 = vmul.f32 %v2160_v15, %v598_v9 }
 0x100   : > { %1659 = vset.pattern.permute.xlu1 %v1740_v4  ;;  %v582_v45 = vpop.permute.xlu2 %581 }
 0x101   : > { %913 = vperm.xlu1 %1659, %v775_v27   ;;  %v534_v27 = vmul.f32 %v2151_v1, %v2110_v59  ;;  %v526_v59 = vmul.f32 %v2151_v1, %v2073_v46  ;;  %v531_v46 = vmul.f32 %v2151_v1, %v2097_v55 }
 0x103   : > { %1660 = vset.pattern.permute.xlu2 %v1741_v34  ;;  %v2259_v47 = vpop.permute.xlu0 %903  ;;  %1055 = vperm.xlu0 %1666, %v1037_v54   ;;  %v728_v54 = vadd.f32 %v696_v19, %v535_v30  ;;  %v692_v19 = vmul.f32 %v2160_v15, %v586_v2  ;;  %v691_v2 = vmul.f32 %v2160_v15, %v582_v45 }
 0x104   : > { %649 = vperm.xlu2 %1660, %v1973_v23   ;;  %v1385_v23 = vld [vmem:[%s2681_s7 + $0x8] sm:$0xff] }
 0x105   : > { %v952_v9 = vadd.f32 %v2225_v48, %v728_v54 }
 0x106   : > { %v594_v31 = vpop.permute.xlu1 %593 }
 0x107   : > { %v694_v58 = vmul.f32 %v2160_v15, %v594_v31 }
 0x109   : > { %908 = vperm.xlu1 %1659, %v774_v0   ;;  %v819_v11 = vpop.permute.xlu2 %818 }
 0x10b   : > { %1307 = vperm.xlu0 %1666, %v1289_v33  }
 0x10c   : > { %645 = vperm.xlu2 %1660, %v1978_v24   ;;  %v2269_v40 = vpop.permute.xlu0 %561 }
 0x10f   : > { %v834_v26 = vpop.permute.xlu1 %833 }
 0x111   : > { %1662 = vset.pattern.permute.xlu1 %v1741_v34  ;;  %v814_v12 = vpop.permute.xlu2 %813 }
 0x112   : > { %641 = vperm.xlu1 %1662, %v1983_v25  }
 0x113   : > { %1399 = vperm.xlu0 %1666, %v1385_v23   ;;  %v727_v23 = vadd.f32 %v695_v38, %v534_v27  ;;  %v984_v38 = vmax.f32 %v952_v9, 0.0 }
 0x114   : > { %1663 = vset.pattern.permute.xlu2 %v1740_v4  ;;  %v606_v24 = vpop.permute.xlu0 %605 }
 0x115   : > { %v697_v25 = vmul.f32 %v2160_v15, %v606_v24  ;;  %898 = vperm.xlu2 %1663, %v772_v16   ;;  %v771_v24 = vld [vmem:[%s2676_s2 + $0xb0] sm:$0xff]  ;;  %v951_v30 = vadd.f32 %v834_v26, %v727_v23  ;;  %v530_v26 = vmul.f32 %v2151_v1, %v2099_v56  ;;  %v1388_v23 = vld [vmem:[%s2681_s7 + $0x20] sm:$0xff] }
 0x117   : > { %v729_v0 = vadd.f32 %v697_v25, %v536_v49  ;;  %v829_v33 = vpop.permute.xlu1 %828  ;;  %v726_v49 = vadd.f32 %v694_v58, %v533_v63  ;;  %v724_v58 = vadd.f32 %v692_v19, %v531_v46  ;;  %v723_v63 = vadd.f32 %v691_v2, %v530_v26 }
 0x119   : > { %v953_v16 = vadd.f32 %v2215_v29, %v729_v0  ;;  %v532_v29 = vmul.f32 %v2151_v1, %v2060_v42  ;;  %v950_v25 = vadd.f32 %v829_v33, %v726_v49  ;;  %v983_v0 = vmax.f32 %v951_v30, 0.0  ;;  %v770_v33 = vld [vmem:[%s2676_s2 + $0xa8] sm:$0xff] }
 0x11a   : > { %637 = vperm.xlu1 %1662, %v1955_v20   ;;  %v566_v31 = vpop.permute.xlu2 %565 }
 0x11b   : > { %v687_v60 = vmul.f32 %v2160_v15, %v566_v31  ;;  %v985_v48 = vmax.f32 %v953_v16, 0.0  ;;  %1322 = vperm.xlu0 %1666, %v1292_v44   ;;  %v948_v44 = vadd.f32 %v819_v11, %v724_v58  ;;  %v982_v9 = vmax.f32 %v950_v25, 0.0 }
 0x11c   : > { %v590_v20 = vpop.permute.xlu0 %589  ;;  %v548_v58 = vmul.f32 %v2151_v1, %v2175_v37  ;;  %v766_v37 = vld [vmem:[%s2676_s2 + $0x88] sm:$0xff] }
 0x11d   : > { %v719_v27 = vadd.f32 %v687_v60, %v526_v59  ;;  %v693_v54 = vmul.f32 %v2160_v15, %v590_v20  ;;  %893 = vperm.xlu2 %1663, %v771_v24   ;;  %1136 = vmatpush.msra.mxu0 %v985_v48  ;;  %v980_v11 = vmax.f32 %v948_v44, 0.0  ;;  %v1390_v24 = vld [vmem:[%s2681_s7 + $0x30] sm:$0xff]  ;;  %v553_v60 = vmul.f32 %v2151_v1, %v2138_v5 }
 0x11e   : > { %1569 = vmatpush.msra.mxu3 %v985_v48  ;;  %v527_v5 = vmul.f32 %v2151_v1, %v2085_v51  ;;  %v528_v51 = vmul.f32 %v2151_v1, %v2042_v36  ;;  %v686_v36 = vmul.f32 %v2160_v15, %v2269_v40 }
 0x11f   : > { %v725_v42 = vadd.f32 %v693_v54, %v532_v29  ;;  %1137 = vmatpush.msra.mxu0 %v984_v38  ;;  %v2315_v55 = vadd.f32 %v2240_v62, %v719_v27  ;;  %v947_v62 = vadd.f32 %v814_v12, %v723_v63  ;;  %v769_v12 = vld [vmem:[%s2676_s2 + $0xa0] sm:$0xff]  ;;  %v529_v29 = vmul.f32 %v2151_v1, %v2051_v39 }
 0x120   : > { %1570 = vmatpush.msra.mxu3 %v984_v38  ;;  %v578_v45 = vpop.permute.xlu1 %577 }
 0x121   : > { %1138 = vmatpush.msra.mxu0 %v983_v0  ;;  %v949_v56 = vadd.f32 %v2221_v8, %v725_v42  ;;  %v979_v8 = vmax.f32 %v947_v62, 0.0  ;;  %v690_v30 = vmul.f32 %v2160_v15, %v578_v45  ;;  %v975_v40 = vmax.f32 %v2315_v55, 0.0 }
 0x122   : > { %1571 = vmatpush.msra.mxu3 %v983_v0  ;;  %1664 = vset.pattern.permute.xlu1 %v1740_v4 }
 0x123   : > { %888 = vperm.xlu1 %1664, %v770_v33   ;;  %1139 = vmatpush.msra.mxu0 %v982_v9  ;;  %v799_v16 = vpop.permute.xlu2 %798  ;;  %v981_v59 = vmax.f32 %v949_v56, 0.0  ;;  %v722_v2 = vadd.f32 %v690_v30, %v529_v29  ;;  %v555_v29 = vmul.f32 %v2151_v1, %v2197_v32  ;;  %v1044_v32 = vld [vmem:[%s2678_s4 + $0x38] sm:$0xff] }
 0x124   : > { %1572 = vmatpush.msra.mxu3 %v982_v9  ;;  %v570_v19 = vpop.permute.xlu0 %569  ;;  %1414 = vperm.xlu0 %1666, %v1388_v23   ;;  %v765_v23 = vld [vmem:[%s2676_s2 + $0x80] sm:$0xff] }
 0x125   : > { %1665 = vset.pattern.permute.xlu2 %v1741_v34  ;;  %1140 = vmatpush.msra.mxu0 %v981_v59  ;;  %v688_v25 = vmul.f32 %v2160_v15, %v570_v19  ;;  %v1051_v19 = vld [vmem:[%s2678_s4 + $0x70] sm:$0xff] }
 0x126   : > { %1573 = vmatpush.msra.mxu3 %v981_v59  ;;  %629 = vperm.xlu2 %1665, %v1965_v22  }
 0x127   : > { %1141 = vmatpush.msra.mxu0 %v980_v11  ;;  %v720_v0 = vadd.f32 %v688_v25, %v527_v5  ;;  %v1007_v5 = vld [vmem:[%s2677_s3 + $0x10] sm:$0xff] }
 0x128   : > { %1574 = vmatpush.msra.mxu3 %v980_v11  ;;  %v574_v31 = vpop.permute.xlu1 %573 }
 0x129   : > { %1142 = vmatpush.msra.mxu0 %v979_v8  ;;  %v689_v54 = vmul.f32 %v2160_v15, %v574_v31  ;;  %v944_v63 = vadd.f32 %v799_v16, %v720_v0  ;;  %v551_v0 = vmul.f32 %v2151_v1, %v2188_v43  ;;  %v1029_v43 = vld [vmem:[%s2677_s3 + $0xc0] sm:$0xff] }
 0x12a   : > { %1575 = vmatpush.msra.mxu3 %v979_v8 }
 0x12b   : > { %883 = vperm.xlu1 %1664, %v769_v12   ;;  %v721_v42 = vadd.f32 %v689_v54, %v528_v51  ;;  %v976_v62 = vmax.f32 %v944_v63, 0.0  ;;  %v1048_v12 = vld [vmem:[%s2678_s4 + $0x58] sm:$0xff]  ;;  %v1009_v63 = vld [vmem:[%s2677_s3 + $0x20] sm:$0xff] }
 0x12c   : > { %v2334_v49 = vpop.permute.xlu2 %681  ;;  %v674_v22 = vpop.permute.xlu0 %673  ;;  %1424 = vperm.xlu0 %1666, %v1390_v24  }
 0x12d   : > { %v714_v48 = vmul.f32 %v2160_v15, %v674_v22  ;;  %v716_v24 = vmul.f32 %v2160_v15, %v2334_v49  ;;  %v1047_v22 = vld [vmem:[%s2678_s4 + $0x50] sm:$0xff] }
 0x12e   : > { %625 = vperm.xlu2 %1665, %v1940_v17  }
 0x12f   : > { %v746_v46 = vadd.f32 %v714_v48, %v553_v60  ;;  %v1005_v60 = vld [vmem:[%s2677_s3] sm:$0xff]  ;;  %v748_v49 = vadd.f32 %v716_v24, %v555_v29  ;;  %v1015_v29 = vld [vmem:[%s2677_s3 + $0x50] sm:$0xff] }
 0x131   : > { %v809_v20 = vpop.permute.xlu1 %808  ;;  %v2343_v38 = vadd.f32 %v2249_v41, %v746_v46  ;;  %v767_v41 = vld [vmem:[%s2676_s2 + $0x90] sm:$0xff] }
 0x132   : > { %v946_v27 = vadd.f32 %v809_v20, %v722_v2  ;;  %v1045_v20 = vld [vmem:[%s2678_s4 + $0x40] sm:$0xff] }
 0x133   : > { %1667 = vset.pattern.permute.xlu1 %v1741_v34 }
 0x134   : > { %v978_v26 = vmax.f32 %v946_v27, 0.0  ;;  %621 = vperm.xlu1 %1667, %v1945_v18   ;;  %v2351_v17 = vpop.permute.xlu2 %677  ;;  %v654_v39 = vpop.permute.xlu0 %653 }
 0x135   : > { %v709_v34 = vmul.f32 %v2160_v15, %v654_v39  ;;  %v715_v25 = vmul.f32 %v2160_v15, %v2351_v17  ;;  %v554_v39 = vmul.f32 %v2151_v1, %v2199_v50  ;;  %v1042_v50 = vld [vmem:[%s2678_s4 + $0x28] sm:$0xff] }
 0x136   : > { %1668 = vset.pattern.permute.xlu2 %v1740_v4  ;;  %1143 = vmatpush.msra.mxu0 %v978_v26 }
 0x137   : > { %v741_v18 = vadd.f32 %v709_v34, %v548_v58  ;;  %1576 = vmatpush.msra.mxu3 %v978_v26  ;;  %873 = vperm.xlu2 %1668, %v767_v41   ;;  %v1027_v26 = vld [vmem:[%s2677_s3 + $0xb0] sm:$0xff]  ;;  %v552_v41 = vmul.f32 %v2151_v1, %v2186_v21  ;;  %v747_v34 = vadd.f32 %v715_v25, %v554_v39  ;;  %v1041_v21 = vld [vmem:[%s2678_s4 + $0x20] sm:$0xff] }
 0x138   : > { %v547_v25 = vmul.f32 %v2151_v1, %v2116_v61  ;;  %v1017_v61 = vld [vmem:[%s2677_s3 + $0x60] sm:$0xff] }
 0x139   : > { %v804_v45 = vpop.permute.xlu1 %803  ;;  %v2363_v33 = vadd.f32 %v2259_v47, %v741_v18  ;;  %v525_v47 = vmul.f32 %v2151_v1, %v2087_v52  ;;  %v1050_v52 = vld [vmem:[%s2678_s4 + $0x68] sm:$0xff] }
 0x13a   : > { %v945_v44 = vadd.f32 %v804_v45, %v721_v42 }
 0x13b   : > { %v718_v16 = vadd.f32 %v686_v36, %v525_v47 }
 0x13c   : > { %v977_v9 = vmax.f32 %v945_v44, 0.0  ;;  %1669 = vset.pattern.permute.xlu1 %v1740_v4  ;;  %v670_v56 = vpop.permute.xlu2 %669 }
 0x13d   : > { %868 = vperm.xlu1 %1669, %v766_v37   ;;  %v713_v17 = vmul.f32 %v2160_v15, %v670_v56 }
 0x13e   : > { %1144 = vmatpush.msra.mxu0 %v977_v9  ;;  %1577 = vmatpush.msra.mxu3 %v977_v9  ;;  %v1002_v9 = vmax.f32 %v2343_v38, 0.0  ;;  %v1038_v38 = vld [vmem:[%s2678_s4 + $0x8] sm:$0xff] }
 0x13f   : > { %863 = vperm.xlu2 %1668, %v765_v23   ;;  %v745_v18 = vadd.f32 %v713_v17, %v552_v41  ;;  %v1386_v17 = vld [vmem:[%s2681_s7 + $0x10] sm:$0xff] }
 0x140   : > { %1145 = vmatpush.msra.mxu0 %v976_v62  ;;  %1578 = vmatpush.msra.mxu3 %v976_v62 }
 0x141   : > { %v789_v59 = vpop.permute.xlu1 %788 }
 0x142   : > { %v942_v4 = vadd.f32 %v789_v59, %v718_v16  ;;  %1146 = vmatpush.msra.mxu0 %v975_v40  ;;  %1579 = vmatpush.msra.mxu3 %v975_v40  ;;  %v1039_v16 = vld [vmem:[%s2678_s4 + $0x10] sm:$0xff] }
 0x143   : > { %v1011_v40 = vld [vmem:[%s2677_s3 + $0x30] sm:$0xff] }
 0x144   : > { %v974_v11 = vmax.f32 %v942_v4, 0.0  ;;  %v666_v8 = vpop.permute.xlu2 %665  ;;  %v1031_v59 = vld [vmem:[%s2677_s3 + $0xd0] sm:$0xff] }
 0x145   : > { %1125 = vperm.xlu1 %1669, %v1051_v19   ;;  %v712_v58 = vmul.f32 %v2160_v15, %v666_v8  ;;  %v1288_v8 = vld [vmem:[%s2680_s6 + $0x8] sm:$0xff] }
 0x146   : > { %1147 = vmatpush.msra.mxu0 %v974_v11  ;;  %1580 = vmatpush.msra.mxu3 %v974_v11  ;;  %v1287_v11 = vld [vmem:[%s2680_s6] sm:$0xff] }
 0x147   : > { %1120 = vperm.xlu2 %1668, %v1050_v52   ;;  %v744_v44 = vadd.f32 %v712_v58, %v551_v0  ;;  %v1013_v52 = vld [vmem:[%s2677_s3 + $0x40] sm:$0xff] }
 0x149   : > { %v784_v31 = vpop.permute.xlu1 %783 }
 0x14a   : > { %v941_v55 = vadd.f32 %v784_v31, %v2169_v28  ;;  %v1025_v28 = vld [vmem:[%s2677_s3 + $0xa0] sm:$0xff] }
 0x14b   : > { %v1033_v31 = vld [vmem:[%s2677_s3 + $0xe0] sm:$0xff] }
 0x14c   : > { %v973_v30 = vmax.f32 %v941_v55, 0.0 }
 0x14d   : > { %1110 = vperm.xlu1 %1669, %v1048_v12   ;;  %v924_v48 = vpop.permute.xlu2 %923  ;;  %v550_v12 = vmul.f32 %v2151_v1, %v2129_v3  ;;  %v1035_v3 = vld [vmem:[%s2677_s3 + $0xf0] sm:$0xff] }
 0x14e   : > { %1148 = vmatpush.msra.mxu0 %v973_v30  ;;  %1581 = vmatpush.msra.mxu3 %v973_v30  ;;  %v969_v45 = vadd.f32 %v924_v48, %v745_v18  ;;  %v1290_v30 = vld [vmem:[%s2680_s6 + $0x18] sm:$0xff] }
 0x14f   : > { %1105 = vperm.xlu2 %1668, %v1047_v22   ;;  %1149 = vmatmul.f32.vlgmr.msra.gmra.mxu0 %v1005_v60 }
 0x150   : > { %1179 = vmatmul.f32.vlgmr.msra.gmra.mxu3 %v1025_v28  ;;  %v1001_v23 = vmax.f32 %v969_v45, 0.0  ;;  %v1384_v28 = vld [vmem:[%s2681_s7] sm:$0xff] }
 0x151   : > { %v939_v46 = vpop.permute.xlu1 %938 }
 0x152   : > { %v972_v2 = vadd.f32 %v939_v46, %v748_v49 }
 0x154   : > { %v1004_v27 = vmax.f32 %v972_v2, 0.0  ;;  %v549_v2 = vmul.f32 %v2151_v1, %v2173_v35 }
 0x155   : > { %1095 = vperm.xlu1 %1669, %v1045_v20   ;;  %v919_v54 = vpop.permute.xlu2 %918 }
 0x156   : > { %1198 = vmatpush.msra.mxu1 %v1004_v27  ;;  %1582 = vmatpush.msrb.mxu3 %v1004_v27  ;;  %v968_v36 = vadd.f32 %v919_v54, %v744_v44  ;;  %v1293_v44 = vld [vmem:[%s2680_s6 + $0x30] sm:$0xff] }
 0x157   : > { %1090 = vperm.xlu2 %1668, %v1044_v32   ;;  %1152 = vmatmul.f32.gmra.mxu0 %v1007_v5  ;;  %v1291_v5 = vld [vmem:[%s2680_s6 + $0x20] sm:$0xff] }
 0x158   : > { %1182 = vmatmul.f32.gmra.mxu3 %v1027_v26  ;;  %v1000_v47 = vmax.f32 %v968_v36, 0.0  ;;  %v546_v26 = vmul.f32 %v2151_v1, %v2155_v13  ;;  %v997_v13 = vmax.f32 %v2363_v33, 0.0  ;;  %v1021_v36 = vld [vmem:[%s2677_s3 + $0x80] sm:$0xff] }
 0x159   : > { %v934_v51 = vpop.permute.xlu1 %933 }
 0x15a   : > { %v971_v42 = vadd.f32 %v934_v51, %v747_v34 }
 0x15c   : > { %v1003_v37 = vmax.f32 %v971_v42, 0.0  ;;  %v1387_v42 = vld [vmem:[%s2681_s7 + $0x18] sm:$0xff] }
 0x15d   : > { %1080 = vperm.xlu1 %1669, %v1042_v50  }
 0x15e   : > { %1199 = vmatpush.msra.mxu1 %v1003_v37  ;;  %1583 = vmatpush.msrb.mxu3 %v1003_v37  ;;  %v650_v56 = vpop.permute.xlu2 %649  ;;  %v1019_v37 = vld [vmem:[%s2677_s3 + $0x70] sm:$0xff] }
 0x15f   : > { %1075 = vperm.xlu2 %1668, %v1041_v21   ;;  %1155 = vmatmul.f32.gmra.mxu0 %v1009_v63  ;;  %v708_v20 = vmul.f32 %v2160_v15, %v650_v56  ;;  %v1294_v21 = vld [vmem:[%s2680_s6 + $0x38] sm:$0xff]  ;;  %v634_v56 = vpop.permute.xlu0 %633 }
 0x160   : > { %1185 = vmatmul.f32.gmra.mxu3 %v1029_v43  ;;  %1200 = vmatpush.msra.mxu1 %v1002_v9  ;;  %v1389_v43 = vld [vmem:[%s2681_s7 + $0x28] sm:$0xff] }
 0x161   : > { %1584 = vmatpush.msrb.mxu3 %v1002_v9  ;;  %v740_v35 = vadd.f32 %v708_v20, %v547_v25  ;;  %v541_v25 = vmul.f32 %v2151_v1, %v2092_v53  ;;  %v1008_v53 = vld [vmem:[%s2677_s3 + $0x18] sm:$0xff] }
 0x162   : > { %v662_v62 = vpop.permute.xlu1 %661  ;;  %1201 = vmatpush.msra.mxu1 %v1001_v23 }
 0x163   : > { %1585 = vmatpush.msrb.mxu3 %v1001_v23  ;;  %v711_v55 = vmul.f32 %v2160_v15, %v662_v62  ;;  %v545_v23 = vmul.f32 %v2151_v1, %v2157_v14 }
 0x164   : > { %1202 = vmatpush.msra.mxu1 %v1000_v47 }
 0x165   : > { %1586 = vmatpush.msrb.mxu3 %v1000_v47  ;;  %1065 = vperm.xlu1 %1669, %v1039_v16   ;;  %v743_v24 = vadd.f32 %v711_v55, %v550_v12  ;;  %v1391_v47 = vld [vmem:[%s2681_s7 + $0x38] sm:$0xff]  ;;  %v542_v12 = vmul.f32 %v2151_v1, %v2142_v6 }
 0x166   : > { %v646_v4 = vpop.permute.xlu2 %645 }
 0x167   : > { %1060 = vperm.xlu2 %1668, %v1038_v38   ;;  %1158 = vmatmul.f32.gmra.mxu0 %v1011_v40  ;;  %v707_v27 = vmul.f32 %v2160_v15, %v646_v4  ;;  %v1462_v38 = vld [vmem:[#allocation2] sm:$0x1]  ;;  %v1023_v40 = vld [vmem:[%s2677_s3 + $0x90] sm:$0xff]  ;;  %v879_v55 = vpop.permute.xlu0 %878 }
 0x168   : > { %1188 = vmatmul.f32.gmra.mxu3 %v1031_v59 }
 0x169   : > { %v739_v34 = vadd.f32 %v707_v27, %v546_v26 }
 0x16a   : > { %v658_v19 = vpop.permute.xlu1 %657 }
 0x16b   : > { %v710_v49 = vmul.f32 %v2160_v15, %v658_v19  ;;  %v704_v19 = vmul.f32 %v2160_v15, %v634_v56 }
 0x16d   : > { %1297 = vperm.xlu1 %1669, %v1287_v11   ;;  %v742_v32 = vadd.f32 %v710_v49, %v549_v2  ;;  %v540_v2 = vmul.f32 %v2151_v1, %v2131_v7  ;;  %v1026_v7 = vld [vmem:[%s2677_s3 + $0xa8] sm:$0xff] }
 0x16f   : > { %1302 = vperm.xlu2 %1668, %v1288_v8   ;;  %1161 = vmatmul.f32.gmra.mxu0 %v1013_v52  ;;  %v899_v22 = vpop.permute.xlu2 %898  ;;  %v544_v8 = vmul.f32 %v2151_v1, %v2105_v57  ;;  %v543_v52 = vmul.f32 %v2151_v1, %v2140_v10  ;;  %v1028_v1 = vld [vmem:[%s2677_s3 + $0xb8] sm:$0xff] }
 0x170   : > { %1191 = vmatmul.f32.gmra.mxu3 %v1033_v31  ;;  %v964_v58 = vadd.f32 %v899_v22, %v740_v35 }
 0x172   : > { %v996_v18 = vmax.f32 %v964_v58, 0.0  ;;  %v1012_v58 = vld [vmem:[%s2677_s3 + $0x38] sm:$0xff] }
 0x173   : > { %v914_v60 = vpop.permute.xlu1 %913 }
 0x174   : > { %v967_v48 = vadd.f32 %v914_v60, %v743_v24  ;;  %v736_v24 = vadd.f32 %v704_v19, %v543_v52 }
 0x175   : > { %1312 = vperm.xlu1 %1669, %v1290_v30  }
 0x176   : > { %v999_v46 = vmax.f32 %v967_v48, 0.0  ;;  %v960_v48 = vadd.f32 %v879_v55, %v736_v24 }
 0x177   : > { %1394 = vperm.xlu2 %1668, %v1384_v28   ;;  %1164 = vmatmul.f32.gmra.mxu0 %v1015_v29  ;;  %v894_v41 = vpop.permute.xlu2 %893 }
 0x178   : > { %1194 = vmatmul.f32.gmra.mxu3 %v1035_v3  ;;  %1203 = vmatpush.msra.mxu1 %v999_v46  ;;  %v963_v0 = vadd.f32 %v894_v41, %v739_v34  ;;  %v992_v49 = vmax.f32 %v960_v48, 0.0  ;;  %v1030_v41 = vld [vmem:[%s2677_s3 + $0xc8] sm:$0xff]  ;;  %v1032_v34 = vld [vmem:[%s2677_s3 + $0xd8] sm:$0xff] }
 0x179   : > { %1587 = vmatpush.msrb.mxu3 %v999_v46 }
 0x17a   : > { %v995_v50 = vmax.f32 %v963_v0, 0.0  ;;  %v1034_v0 = vld [vmem:[%s2677_s3 + $0xe8] sm:$0xff] }
 0x17b   : > { %v909_v54 = vpop.permute.xlu1 %908 }
 0x17c   : > { %v966_v39 = vadd.f32 %v909_v54, %v742_v32 }
 0x17d   : > { %1317 = vperm.xlu1 %1669, %v1291_v5  }
 0x17e   : > { %v998_v51 = vmax.f32 %v966_v39, 0.0 }
 0x17f   : > { %1404 = vperm.xlu2 %1668, %v1386_v17   ;;  %1167 = vmatmul.f32.gmra.mxu0 %v1017_v61  ;;  %v1006_v61 = vld [vmem:[%s2677_s3 + $0x8] sm:$0xff] }
 0x180   : > { %1204 = vmatpush.msra.mxu1 %v998_v51  ;;  %1588 = vmatpush.msrb.mxu3 %v998_v51  ;;  %v630_v33 = vpop.permute.xlu2 %629  ;;  %v1014_v51 = vld [vmem:[%s2677_s3 + $0x48] sm:$0xff] }
 0x181   : > { %v703_v31 = vmul.f32 %v2160_v15, %v630_v33 }
 0x182   : > { %1205 = vmatpush.msra.mxu1 %v997_v13  ;;  %1589 = vmatpush.msrb.mxu3 %v997_v13  ;;  %v1016_v13 = vld [vmem:[%s2677_s3 + $0x58] sm:$0xff] }
 0x183   : > { %v735_v28 = vadd.f32 %v703_v31, %v542_v12 }
 0x184   : > { %v642_v45 = vpop.permute.xlu1 %641  ;;  %1206 = vmatpush.msra.mxu1 %v996_v18  ;;  %1590 = vmatpush.msrb.mxu3 %v996_v18  ;;  %v1036_v18 = vld [vmem:[%s2677_s3 + $0xf8] sm:$0xff] }
 0x185   : > { %1409 = vperm.xlu1 %1669, %v1387_v42   ;;  %v706_v9 = vmul.f32 %v2160_v15, %v642_v45  ;;  %v1018_v42 = vld [vmem:[%s2677_s3 + $0x68] sm:$0xff] }
 0x186   : > { %1207 = vmatpush.msra.mxu1 %v995_v50  ;;  %1591 = vmatpush.msrb.mxu3 %v995_v50  ;;  %v1020_v50 = vld [vmem:[%s2677_s3 + $0x78] sm:$0xff]  ;;  %v1022_v45 = vld [vmem:[%s2677_s3 + $0x88] sm:$0xff] }
 0x187   : > { %1327 = vperm.xlu2 %1668, %v1293_v44   ;;  %1170 = vmatmul.f32.gmra.mxu0 %v1019_v37  ;;  %v738_v16 = vadd.f32 %v706_v9, %v545_v23  ;;  %v1024_v44 = vld [vmem:[%s2677_s3 + $0x98] sm:$0xff]  ;;  %v1131_v37 = vpop.permute.xlu0 %1130 }
 0x188   : > { %v626_v62 = vpop.permute.xlu2 %625 }
 0x189   : > { %v702_v20 = vmul.f32 %v2160_v15, %v626_v62 }
 0x18b   : > { %v734_v32 = vadd.f32 %v702_v20, %v541_v25 }
 0x18c   : > { %v638_v63 = vpop.permute.xlu1 %637 }
 0x18d   : > { %1332 = vperm.xlu1 %1669, %v1294_v21   ;;  %v705_v14 = vmul.f32 %v2160_v15, %v638_v63 }
 0x18f   : > { %1419 = vperm.xlu2 %1668, %v1389_v43   ;;  %1173 = vmatmul.f32.gmra.mxu0 %v1021_v36  ;;  %v737_v30 = vadd.f32 %v705_v14, %v544_v8  ;;  %v1116_v21 = vpop.permute.xlu0 %1115 }
 0x191   : > { %v874_v22 = vpop.permute.xlu2 %873 }
 0x192   : > { %v959_v3 = vadd.f32 %v874_v22, %v735_v28 }
 0x194   : > { %v991_v10 = vmax.f32 %v959_v3, 0.0 }
 0x195   : > { %1429 = vperm.xlu1 %1669, %v1391_v47   ;;  %v889_v59 = vpop.permute.xlu1 %888 }
 0x196   : > { %v962_v4 = vadd.f32 %v889_v59, %v738_v16 }
 0x197   : > { %1465 = vperm.xlu2 %1668, %v1462_v38   ;;  %1176 = vmatmul.f32.gmra.mxu0 %v1023_v40  ;;  %v2583_v36 = vpop.permute.xlu0 %1100 }
 0x198   : > { %v994_v11 = vmax.f32 %v962_v4, 0.0 }
 0x199   : > { %v864_v5 = vpop.permute.xlu2 %863 }
 0x19a   : > { %1208 = vmatpush.msra.mxu1 %v994_v11  ;;  %1592 = vmatpush.msrb.mxu3 %v994_v11 }
 0x19d   : > { %v884_v60 = vpop.permute.xlu1 %883 }
 0x19e   : > { %v961_v29 = vadd.f32 %v884_v60, %v737_v30 }
 0x19f   : > { %v2585_v47 = vpop.permute.xlu0 %1085 }
 0x1a0   : > { %v993_v57 = vmax.f32 %v961_v29, 0.0 }
 0x1a1   : > { %v1121_v43 = vpop.permute.xlu2 %1120 }
 0x1a2   : > { %1209 = vmatpush.msra.mxu1 %v993_v57  ;;  %1593 = vmatpush.msrb.mxu3 %v993_v57 }
 0x1a4   : > { %1210 = vmatpush.msra.mxu1 %v992_v49  ;;  %1594 = vmatpush.msrb.mxu3 %v992_v49 }
 0x1a6   : > { %v622_v46 = vpop.permute.xlu1 %621  ;;  %1211 = vmatpush.msra.mxu1 %v991_v10  ;;  %1595 = vmatpush.msrb.mxu3 %v991_v10 }
 0x1a7   : > { %v701_v6 = vmul.f32 %v2160_v15, %v622_v46  ;;  %v1010_v15 = vld [vmem:[%s2677_s3 + $0x28] sm:$0xff]  ;;  %v2589_v59 = vpop.permute.xlu0 %1070 }
 0x1a9   : > { %v733_v27 = vadd.f32 %v701_v6, %v540_v2  ;;  %v1106_v23 = vpop.permute.xlu2 %1105 }
 0x1ab   : > { %v957_v35 = vadd.f32 %v864_v5, %v733_v27 }
 0x1ad   : > { %v989_v17 = vmax.f32 %v957_v35, 0.0 }
 0x1af   : > { %v869_v54 = vpop.permute.xlu1 %868  ;;  %v1056_v8 = vpop.permute.xlu0 %1055 }
 0x1b0   : > { %v958_v26 = vadd.f32 %v869_v54, %v734_v32 }
 0x1b1   : > { %v2587_v40 = vpop.permute.xlu2 %1090 }
 0x1b2   : > { %v990_v39 = vmax.f32 %v958_v26, 0.0 }
 0x1b4   : > { %1212 = vmatpush.msra.mxu1 %v990_v39  ;;  %1596 = vmatpush.msrb.mxu3 %v990_v39 }
 0x1b6   : > { %1213 = vmatpush.msra.mxu1 %v989_v17  ;;  %1597 = vmatpush.msrb.mxu3 %v989_v17 }
 0x1b7   : > { %1214 = vmatmul.f32.vlgmr.msra.gmra.mxu1 %v1006_v61  ;;  %1244 = vmatmul.f32.vlgmr.msrb.gmra.mxu3 %v1026_v7  ;;  %v1126_v56 = vpop.permute.xlu1 %1125 }
 0x1b9   : > { %v2591_v11 = vpop.permute.xlu2 %1075 }
 0x1bf   : > { %1217 = vmatmul.f32.gmra.mxu1 %v1008_v53  ;;  %1247 = vmatmul.f32.gmra.mxu3 %v1028_v1  ;;  %v1111_v38 = vpop.permute.xlu1 %1110 }
 0x1c1   : > { %v1061_v22 = vpop.permute.xlu2 %1060 }
 0x1c7   : > { %1220 = vmatmul.f32.gmra.mxu1 %v1010_v15  ;;  %1250 = vmatmul.f32.gmra.mxu3 %v1030_v41  ;;  %v1096_v14 = vpop.permute.xlu1 %1095 }
 0x1cc   : > { %v1150_v62 = vpop.f32.mrf.mxu0 }
 0x1cd   : > { %v1151_v55 = vadd.f32 %v1150_v62, %v1056_v8 }
 0x1cf   : > { %1223 = vmatmul.f32.gmra.mxu1 %v1012_v58  ;;  %1253 = vmatmul.f32.gmra.mxu3 %v1032_v34  ;;  %v1081_v30 = vpop.permute.xlu1 %1080 }
 0x1d3   : > { %v1180_v33 = vpop.f32.mrf.mxu3 }
 0x1d4   : > { %v1153_v4 = vpop.f32.mrf.mxu0 }
 0x1d5   : > { %v1154_v48 = vadd.f32 %v1153_v4, %v1061_v22 }
 0x1d7   : > { %1226 = vmatmul.f32.gmra.mxu1 %v1014_v51  ;;  %1256 = vmatmul.f32.gmra.mxu3 %v1034_v0  ;;  %v1066_v57 = vpop.permute.xlu1 %1065 }
 0x1db   : > { %v1183_v63 = vpop.f32.mrf.mxu3 }
 0x1dc   : > { %v1156_v52 = vpop.f32.mrf.mxu0  ;;  %v1184_v0 = vadd.f32 %v1183_v63, %v1111_v38 }
 0x1dd   : > { %v1157_v10 = vadd.f32 %v1156_v52, %v1066_v57 }
 0x1df   : > { %1229 = vmatmul.f32.gmra.mxu1 %v1016_v13  ;;  %1259 = vmatmul.f32.gmra.mxu3 %v1036_v18 }
 0x1e3   : > { %v1186_v9 = vpop.f32.mrf.mxu3 }
 0x1e4   : > { %v2595_v28 = vpop.f32.mrf.mxu0  ;;  %v1187_v58 = vadd.f32 %v1186_v9, %v1116_v21 }
 0x1e7   : > { %1232 = vmatmul.f32.gmra.mxu1 %v1018_v42  ;;  %v1181_v42 = vadd.f32 %v1180_v33, %v1106_v23 }
 0x1eb   : > { %v1189_v16 = vpop.f32.mrf.mxu3 }
 0x1ec   : > { %v1162_v2 = vpop.f32.mrf.mxu0  ;;  %v1190_v7 = vadd.f32 %v1189_v16, %v1121_v43 }
 0x1ef   : > { %1235 = vmatmul.f32.gmra.mxu1 %v1020_v50 }
 0x1f3   : > { %v1192_v19 = vpop.f32.mrf.mxu3 }
 0x1f4   : > { %v1165_v27 = vpop.f32.mrf.mxu0  ;;  %v1193_v39 = vadd.f32 %v1192_v19, %v1126_v56 }
 0x1f7   : > { %1238 = vmatmul.f32.gmra.mxu1 %v1022_v45 }
 0x1fb   : > { %v1195_v31 = vpop.f32.mrf.mxu3 }
 0x1fc   : > { %v1168_v54 = vpop.f32.mrf.mxu0  ;;  %v1196_v17 = vadd.f32 %v1195_v31, %v1131_v37 }
 0x1fd   : > { %v1169_v8 = vadd.f32 %v1168_v54, %v2585_v47  ;;  %v1303_v54 = vpop.permute.xlu2 %1302 }
 0x1ff   : > { %1241 = vmatmul.f32.gmra.mxu1 %v1024_v44 }
 0x204   : > { %v1171_v15 = vpop.f32.mrf.mxu0 }
 0x205   : > { %v1172_v33 = vadd.f32 %v1171_v15, %v2587_v40 }
 0x20c   : > { %v1174_v62 = vpop.f32.mrf.mxu0 }
 0x20d   : > { %v1175_v63 = vadd.f32 %v1174_v62, %v1096_v14 }
 0x214   : > { %v1177_v9 = vpop.f32.mrf.mxu0 }
 0x215   : > { %v1178_v38 = vadd.f32 %v1177_v9, %v2583_v36  ;;  %v1160_v36 = vadd.f32 %v2595_v28, %v2589_v59  ;;  %v1279_v59 = vld [vmem:[%s2679_s5] sm:$0xff]  ;;  %v1280_v28 = vld [vmem:[%s2679_s5 + $0x8] sm:$0xff] }
 0x234   : > { %v1215_v12 = vpop.f32.mrf.mxu1 }
 0x235   : > { %v2593_v24 = vadd.f32 %v1215_v12, %v1151_v55  ;;  %v1166_v55 = vadd.f32 %v1165_v27, %v1081_v30 }
 0x23a   : > { %v1245_v60 = vpop.f32.mrf.mxu3 }
 0x23b   : > { %v1246_v44 = vadd.f32 %v1245_v60, %v1181_v42  ;;  %v1163_v60 = vadd.f32 %v1162_v2, %v2591_v11  ;;  %v1284_v2 = vld [vmem:[%s2679_s5 + $0x28] sm:$0xff] }
 0x23c   : > { %v1218_v29 = vpop.f32.mrf.mxu1 }
 0x23d   : > { %v2597_v3 = vadd.f32 %v1218_v29, %v1154_v48  ;;  %v1273_v16 = vmax.f32 %v1246_v44, 0.0 }
 0x23f   : > { %v1264_v11 = vmax.f32 %v2597_v3, 0.0  ;;  %v1283_v3 = vld [vmem:[%s2679_s5 + $0x20] sm:$0xff] }
 0x242   : > { %v1248_v49 = vpop.f32.mrf.mxu3 }
 0x243   : > { %v1249_v50 = vadd.f32 %v1248_v49, %v1184_v0 }
 0x244   : > { %v1221_v46 = vpop.f32.mrf.mxu1 }
 0x245   : > { %v2599_v6 = vadd.f32 %v1221_v46, %v1157_v10  ;;  %v1274_v43 = vmax.f32 %v1249_v50, 0.0  ;;  %v1263_v46 = vmax.f32 %v2593_v24, 0.0  ;;  %v1282_v24 = vld [vmem:[%s2679_s5 + $0x18] sm:$0xff] }
 0x247   : > { %v1265_v10 = vmax.f32 %v2599_v6, 0.0  ;;  %v1281_v6 = vld [vmem:[%s2679_s5 + $0x10] sm:$0xff] }
 0x24a   : > { %v1251_v20 = vpop.f32.mrf.mxu3 }
 0x24b   : > { %v1252_v13 = vadd.f32 %v1251_v20, %v1187_v58  ;;  %v1285_v20 = vld [vmem:[%s2679_s5 + $0x30] sm:$0xff] }
 0x24c   : > { %v1224_v25 = vpop.f32.mrf.mxu1 }
 0x24d   : > { %v1275_v56 = vmax.f32 %v1252_v13, 0.0  ;;  %v1225_v57 = vadd.f32 %v1224_v25, %v1160_v36  ;;  %v1286_v25 = vld [vmem:[%s2679_s5 + $0x38] sm:$0xff] }
 0x24f   : > { %v1266_v30 = vmax.f32 %v1225_v57, 0.0 }
 0x252   : > { %v1254_v32 = vpop.f32.mrf.mxu3 }
 0x253   : > { %v1255_v34 = vadd.f32 %v1254_v32, %v1190_v7 }
 0x254   : > { %v1227_v5 = vpop.f32.mrf.mxu1 }
 0x255   : > { %v1276_v45 = vmax.f32 %v1255_v34, 0.0  ;;  %v1228_v14 = vadd.f32 %v1227_v5, %v1163_v60  ;;  %v1298_v5 = vpop.permute.xlu1 %1297 }
 0x257   : > { %v1267_v47 = vmax.f32 %v1228_v14, 0.0 }
 0x25a   : > { %v1257_v26 = vpop.f32.mrf.mxu3 }
 0x25b   : > { %v1258_v53 = vadd.f32 %v1257_v26, %v1193_v39  ;;  %v1308_v26 = vpop.permute.xlu0 %1307 }
 0x25c   : > { %v1230_v35 = vpop.f32.mrf.mxu1 }
 0x25d   : > { %v1277_v18 = vmax.f32 %v1258_v53, 0.0  ;;  %v1231_v48 = vadd.f32 %v1230_v35, %v1166_v55  ;;  %v1313_v39 = vpop.permute.xlu1 %1312 }
 0x25f   : > { %v1268_v49 = vmax.f32 %v1231_v48, 0.0 }
 0x262   : > { %v1260_v61 = vpop.f32.mrf.mxu3 }
 0x263   : > { %v1261_v1 = vadd.f32 %v1260_v61, %v1196_v17  ;;  %v1395_v17 = vpop.permute.xlu2 %1394  ;;  %v1400_v61 = vpop.permute.xlu0 %1399 }
 0x264   : > { %v1233_v41 = vpop.f32.mrf.mxu1 }
 0x265   : > { %v1278_v51 = vmax.f32 %v1261_v1, 0.0  ;;  %v1234_v12 = vadd.f32 %v1233_v41, %v1169_v8  ;;  %v1318_v53 = vpop.permute.xlu1 %1317 }
 0x267   : > { %1335 = vmatpush.msra.mxu2 %v1278_v51  ;;  %v1269_v40 = vmax.f32 %v1234_v12, 0.0 }
 0x269   : > { %1336 = vmatpush.msra.mxu2 %v1277_v18 }
 0x26b   : > { %1337 = vmatpush.msra.mxu2 %v1276_v45  ;;  %v1405_v1 = vpop.permute.xlu2 %1404  ;;  %v1323_v41 = vpop.permute.xlu0 %1322 }
 0x26c   : > { %v1236_v37 = vpop.f32.mrf.mxu1 }
 0x26d   : > { %1338 = vmatpush.msra.mxu2 %v1275_v56  ;;  %v1237_v52 = vadd.f32 %v1236_v37, %v1172_v33  ;;  %v1410_v0 = vpop.permute.xlu1 %1409 }
 0x26f   : > { %1339 = vmatpush.msra.mxu2 %v1274_v43  ;;  %v1270_v29 = vmax.f32 %v1237_v52, 0.0 }
 0x271   : > { %1340 = vmatpush.msra.mxu2 %v1273_v16 }
 0x273   : > { %v1328_v50 = vpop.permute.xlu2 %1327  ;;  %v1415_v37 = vpop.permute.xlu0 %1414 }
 0x274   : > { %v1239_v21 = vpop.f32.mrf.mxu1 }
 0x275   : > { %v1240_v23 = vadd.f32 %v1239_v21, %v1175_v63  ;;  %v1333_v8 = vpop.permute.xlu1 %1332 }
 0x277   : > { %v1271_v22 = vmax.f32 %v1240_v23, 0.0 }
 0x27b   : > { %v1425_v36 = vpop.permute.xlu0 %1424 }
 0x27c   : > { %v1242_v4 = vpop.f32.mrf.mxu1 }
 0x27d   : > { %v1243_v19 = vadd.f32 %v1242_v4, %v1178_v38 }
 0x27f   : > { %v1272_v31 = vmax.f32 %v1243_v19, 0.0 }
 0x281   : > { %1341 = vmatpush.msra.mxu2 %v1272_v31 }
 0x283   : > { %1342 = vmatpush.msra.mxu2 %v1271_v22  ;;  %v1420_v22 = vpop.permute.xlu2 %1419 }
 0x285   : > { %1343 = vmatpush.msra.mxu2 %v1270_v29 }
 0x287   : > { %1344 = vmatpush.msra.mxu2 %v1269_v40 }
 0x289   : > { %1345 = vmatpush.msra.mxu2 %v1268_v49 }
 0x28b   : > { %1346 = vmatpush.msra.mxu2 %v1267_v47 }
 0x28d   : > { %1347 = vmatpush.msra.mxu2 %v1266_v30 }
 0x28f   : > { %1348 = vmatpush.msra.mxu2 %v1265_v10 }
 0x291   : > { %1349 = vmatpush.msra.mxu2 %v1264_v11 }
 0x293   : > { %1350 = vmatpush.msra.mxu2 %v1263_v46 }
 0x294   : > { %1351 = vmatmul.f32.vlgmr.msra.gmra.mxu2 %v1279_v59 }
 0x29c   : > { %1354 = vmatmul.f32.gmra.mxu2 %v1280_v28  ;;  %v1430_v28 = vpop.permute.xlu1 %1429 }
 0x2a4   : > { %1357 = vmatmul.f32.gmra.mxu2 %v1281_v6 }
 0x2ac   : > { %1360 = vmatmul.f32.gmra.mxu2 %v1282_v24 }
 0x2b4   : > { %1363 = vmatmul.f32.gmra.mxu2 %v1283_v3 }
 0x2bc   : > { %1366 = vmatmul.f32.gmra.mxu2 %v1284_v2 }
 0x2c4   : > { %1369 = vmatmul.f32.gmra.mxu2 %v1285_v20 }
 0x2cc   : > { %1372 = vmatmul.f32.gmra.mxu2 %v1286_v25 }
 0x317   : > { %v1352_v27 = vpop.f32.mrf.mxu2 }
 0x318   : > { %v1353_v34 = vadd.f32 %v1352_v27, %v1298_v5 }
 0x31a   : > { %v1376_v45 = vmax.f32 %v1353_v34, 0.0 }
 0x31c   : > { %v1432_v21 = vmul.f32 %v1395_v17, %v1376_v45 }
 0x31e   : > { %v1441_v52 = vsel %vm1440_vm0, %v1432_v21, 0.0 }
 0x31f   : > { %v1355_v32 = vpop.f32.mrf.mxu2 }
 0x320   : > { %v1356_v58 = vadd.f32 %v1355_v32, %v1303_v54  ;;  %v1466_v54 = vpop.permute.xlu2 %1465 }
 0x322   : > { %v1377_v18 = vmax.f32 %v1356_v58, 0.0 }
 0x324   : > { %v1433_v43 = vmul.f32 %v1400_v61, %v1377_v18 }
 0x326   : > { %v1442_v4 = vsel %vm1440_vm0, %v1433_v43, 0.0 }
 0x327   : > { %v1358_v35 = vpop.f32.mrf.mxu2  ;;  %v1443_v60 = vadd.f32 %v1442_v4, %v1441_v52 }
 0x328   : > { %v1359_v51 = vadd.f32 %v1358_v35, %v1308_v26  ;;  %v1468_v35 = vperm.slane %v1466_v54, 0 }
 0x32a   : > { %v1378_v44 = vmax.f32 %v1359_v51, 0.0 }
 0x32c   : > { %v1434_v9 = vmul.f32 %v1405_v1, %v1378_v44 }
 0x32e   : > { %v1444_v31 = vsel %vm1440_vm0, %v1434_v9, 0.0 }
 0x32f   : > { %v1361_v7 = vpop.f32.mrf.mxu2  ;;  %v1445_v14 = vadd.f32 %v1444_v31, %v1443_v60 }
 0x330   : > { %v1362_v42 = vadd.f32 %v1361_v7, %v1313_v39 }
 0x332   : > { %v1379_v62 = vmax.f32 %v1362_v42, 0.0 }
 0x334   : > { %v1435_v33 = vmul.f32 %v1410_v0, %v1379_v62 }
 0x336   : > { %v1446_v48 = vsel %vm1440_vm0, %v1435_v33, 0.0 }
 0x337   : > { %v1364_v15 = vpop.f32.mrf.mxu2  ;;  %v1447_v49 = vadd.f32 %v1446_v48, %v1445_v14 }
 0x338   : > { %v1365_v56 = vadd.f32 %v1364_v15, %v1318_v53 }
 0x33a   : > { %v1380_v63 = vmax.f32 %v1365_v56, 0.0 }
 0x33c   : > { %v1436_v55 = vmul.f32 %v1415_v37, %v1380_v63 }
 0x33e   : > { %v1448_v40 = vsel %vm1440_vm0, %v1436_v55, 0.0 }
 0x33f   : > { %v1367_v13 = vpop.f32.mrf.mxu2  ;;  %v1449_v11 = vadd.f32 %v1448_v40, %v1447_v49 }
 0x340   : > { %v1368_v16 = vadd.f32 %v1367_v13, %v1323_v41 }
 0x342   : > { %v1381_v23 = vmax.f32 %v1368_v16, 0.0 }
 0x344   : > { %v1437_v29 = vmul.f32 %v1420_v22, %v1381_v23 }
 0x346   : > { %v1450_v30 = vsel %vm1440_vm0, %v1437_v29, 0.0 }
 0x347   : > { %v1370_v38 = vpop.f32.mrf.mxu2  ;;  %v1451_v6 = vadd.f32 %v1450_v30, %v1449_v11 }
 0x348   : > { %v1371_v19 = vadd.f32 %v1370_v38, %v1328_v50 }
 0x34a   : > { %v1382_v12 = vmax.f32 %v1371_v19, 0.0 }
 0x34c   : > { %v1438_v57 = vmul.f32 %v1425_v36, %v1382_v12 }
 0x34e   : > { %v1452_v46 = vsel %vm1440_vm0, %v1438_v57, 0.0 }
 0x34f   : > { %v1373_v47 = vpop.f32.mrf.mxu2  ;;  %v1453_v3 = vadd.f32 %v1452_v46, %v1451_v6 }
 0x350   : > { %v1374_v10 = vadd.f32 %v1373_v47, %v1333_v8 }
 0x352   : > { %v1383_v59 = vmax.f32 %v1374_v10, 0.0 }
 0x354   : > { %v1439_v24 = vmul.f32 %v1430_v28, %v1383_v59 }
 0x356   : > { %v1454_v2 = vsel %vm1440_vm0, %v1439_v24, 0.0 }
 0x357   : > { %v1455_v20 = vadd.f32 %v1454_v2, %v1453_v3 }
 0x359   : > { %v1456_v25 = vrot.slane %v1455_v20, 4 }
 0x35b   : > { %v1457_v27 = vadd.f32 %v1456_v25, %v1455_v20 }
 0x35d   : > { %v1458_v32 = vrot.slane %v1457_v27, 2 }
 0x35f   : > { %v1459_v5 = vadd.f32 %v1458_v32, %v1457_v27 }
 0x361   : > { %v1460_v26 = vrot.slane %v1459_v5, 1 }
 0x363   : > { %v1461_v39 = vadd.f32 %v1460_v26, %v1459_v5 }
 0x365   : > { %v1469_v17 = vadd.f32 %v1468_v35, %v1461_v39 }
 0x367   : > { %v1470_v61 = vsub.f32 0.0, %v1469_v17 }
 0x369   : > { %v1471_v7 = vmul.f32 1.442695, %v1470_v61 }
 0x36b   : > { %1672 = vpow2.f32 %v1471_v7 }
 0x371   : > { %v1673_v53 = vpop.eup %1672 }
 0x372   : > { %v1473_v1 = vadd.f32 1.0, %v1673_v53 }
 0x374   : > { %1674 = vrcp.f32 %v1473_v1  ;;  %v1485_v34 = vand.u32 2147483648, %v1473_v1  ;;  %v1483_v0 = vand.u32 2147483647, %v1473_v1  ;;  %vm1479_vm2 = vweird.f32 %v1473_v1 }
 0x376   : > { %v1486_v18 = vor.u32 1.1754944e-38, %v1485_v34  ;;  %vm1484_vm5 = vcmp.eq.f32.partialorder %v1483_v0, 8.507059e+37 }
 0x37a   : > { %v1675_v15 = vpop.eup %1674 }
 0x37b   : > { %v1475_v41 = vmul.f32 %v1675_v15, %v1473_v1  ;;  %vm1480_vm1 = vweird.f32 %v1675_v15 }
 0x37c   : > { %vm1481_vm3 = vmor %vm1479_vm2, %vm1480_vm1 }
 0x37d   : > { %v1476_v58 = vsub.f32 1.0, %v1475_v41 }
 0x37f   : > { %v1477_v51 = vmul.f32 %v1675_v15, %v1476_v58 }
 0x381   : > { %v1478_v13 = vadd.f32 %v1675_v15, %v1477_v51 }
 0x383   : > { %v1482_v42 = vsel %vm1481_vm3, %v1675_v15, %v1478_v13 }
 0x384   : > { %v1487_v50 = vsel %vm1484_vm5, %v1486_v18, %v1482_v42 }
 0x385   : > { %1490 = vst.msk [vmem:[%s324_s24] sm:$0x1] %vm1489_vm4, %v1487_v50 }
 0x386   : > { %1703 = shalt.err (!%p1700_p3)
}
 0x387   : > { %1598 = dma.vmem_to_hbm [thread:$0]  (%p1833_p5), %s1503_s25, 16, %s1505_s15, %s1492_s8  }
 0x388 PF: > { %p1604_p4 = scmp.ge.s32.totalorder %s1738_s14, 2  ;;  %s1516_s17 = sand.u32 1, %s1726_s11  }
 0x389   : > { %s1517_s22 = scalar_lea.sflag [#allocation4], %s1516_s17 }
 0x38a   : > { %p1601_p7 = pnand %p1604_p4, %p1837_p6 }
 0x38c   : > { %p1602_p8 = pneg %p1601_p7 }
 0x38e   : > { %1721 = dma.done.wait (%p1602_p8), %s1517_s22, 16  }
 0x38f   : > { %1723 = vsyncadd (%p1602_p8), %s1517_s22, 4294967280  ;;  %p21_p9 = scmp.ge.s32.totalorder %s1820_s16, 4   ;;  %s2686_s11 = smov %s1730_s12 }
 0x390   : > { %s2687_s12 = smov %s1734_s13  ;;  %s2688_s13 = smov %s1831_s19 }
 0x391   : > { %s2689_s14 = smov %s1820_s16  ;;  %23 = sbr.rel (!%p21_p9) target bundleno = 6 (0x6), region = 91 }
 0x396   :  { %1522 = vsyncpa [#allocation4], 1 }
 0x397   :  { %1524 = vsyncpa [#allocation4 + $0x1], 1 }

</bundles_post_ra>
